<compile_context>
chip_gen: v6e
topology: v6e:2x2x1
jax: 0.10.0
libtpu: 0.0.40
codegen_flags: <defaults>
</compile_context>

<pallas_src>
import math
import jax
import jax.numpy as jnp
from jax.experimental import pallas as pl
from jax.experimental.pallas import tpu as pltpu

# ---- "config" used by the PyTorch module ----
DIM_MODEL = 32
DIM_INNER = 64
NUM_HEADS = 4
DIM_HEAD = DIM_MODEL // NUM_HEADS
EPS = 1e-5


def _layernorm(x, w, b):
    mu = jnp.mean(x, axis=-1, keepdims=True)
    var = jnp.mean((x - mu) ** 2, axis=-1, keepdims=True)
    return (x - mu) * jax.lax.rsqrt(var + EPS) * w + b


def encoder_layer_kernel(
    # inputs
    x_ref, h_ref, bias_ref, r_ref,
    wq_ref, bq_ref, wk_ref, bk_ref, wv_ref, bv_ref, wo_ref, bo_ref,
    ln2_w_ref, ln2_b_ref,
    w1_ref, b1_ref, w2_ref, b2_ref, fln_w_ref, fln_b_ref,
    # outputs
    out_ref, dots_ref,
):
    x = x_ref[0]            # (Sq, D)   f32 — this batch element's queries
    h = h_ref[0]            # (Skv, D)  f32 — this batch element's keys/values source
    bias = bias_ref[0]      # (Sq, Skv) f32 additive mask (0 = attend, -1e9 = masked)

    Sq, D = x.shape
    Skv = h.shape[0]
    H = dots_ref.shape[1]
    dh = D // H

    # ---- fused lane-dense projections: bf16 MXU inputs, f32 accumulation ----
    x_bf = x.astype(jnp.bfloat16)
    h_bf = h.astype(jnp.bfloat16)
    q = jnp.dot(x_bf, wq_ref[...], preferred_element_type=jnp.float32) + bq_ref[...]
    # Hoisted positional term (r = R @ Wr, batch independent) folded into keys:
    #   q @ (k + r)^T == q @ k^T + q @ r^T
    k = jnp.dot(h_bf, wk_ref[...], preferred_element_type=jnp.float32) + bk_ref[...] + r_ref[...]
    v = jnp.dot(h_bf, wv_ref[...], preferred_element_type=jnp.float32) + bv_ref[...]

    # ---- split heads (major axis) only for the attention contractions ----
    qh = jnp.transpose(q.reshape(Sq, H, dh), (1, 0, 2)).astype(jnp.bfloat16)   # (H, Sq, dh)
    kh = jnp.transpose(k.reshape(Skv, H, dh), (1, 0, 2)).astype(jnp.bfloat16)  # (H, Skv, dh)
    vh = jnp.transpose(v.reshape(Skv, H, dh), (1, 0, 2)).astype(jnp.bfloat16)  # (H, Skv, dh)

    scale = 1.0 / math.sqrt(dh)
    s = jnp.einsum('hqd,hkd->hqk', qh, kh,
                   preferred_element_type=jnp.float32) * scale + bias[None, :, :]

    # ---- softmax in f32; reciprocal on the EUP + one Newton step ----
    s_max = jnp.max(s, axis=-1, keepdims=True)
    p = jnp.exp(s - s_max)
    denom = jnp.sum(p, axis=-1, keepdims=True)
    inv = pl.reciprocal(denom, approx=True)
    inv = inv * (2.0 - denom * inv)
    p = p * inv
    dots_ref[0] = p                                                            # (H, Sq, Skv)

    o = jnp.einsum('hqk,hkd->hqd', p.astype(jnp.bfloat16), vh,
                   preferred_element_type=jnp.float32)                         # (H, Sq, dh)
    o = jnp.transpose(o, (1, 0, 2)).reshape(Sq, D)                             # concat heads
    attn = jnp.dot(o.astype(jnp.bfloat16), wo_ref[...],
                   preferred_element_type=jnp.float32) + bo_ref[...]           # (Sq, D)

    # out = dropout(layer_norm2(attn_out + x))   (dropout = identity, eval mode)
    y = _layernorm(attn + x, ln2_w_ref[...], ln2_b_ref[...])

    # FeedForward: layer_norm( Linear2(SiLU(Linear1(y))) + y )
    hdn = jnp.dot(y.astype(jnp.bfloat16), w1_ref[...],
                  preferred_element_type=jnp.float32) + b1_ref[...]
    hdn = hdn * jax.nn.sigmoid(hdn)                                            # SiLU
    ff = jnp.dot(hdn.astype(jnp.bfloat16), w2_ref[...],
                 preferred_element_type=jnp.float32) + b2_ref[...]
    out = _layernorm(ff + y, fln_w_ref[...], fln_b_ref[...])

    out_ref[0] = out.astype(out_ref.dtype)


def encoder_layer(x, mem, c_mem, mask, R, params):
    B, Sq, D = x.shape
    H = NUM_HEADS
    h = jnp.concatenate([c_mem, mem, x], axis=1)            # (B, Skv, D)
    Skv = h.shape[1]

    # Additive attention bias (0 = attend, -1e9 = masked), per batch element.
    bias = jnp.where(mask > 0, 0.0, -1e9).astype(jnp.float32)      # (B, Sq, Skv)

    # Hoisted positional projection (batch independent), folded into keys in-kernel.
    # TODO(synk): MultiHeadAttention source was not provided; standard content attention
    # + additive q @ (R Wr)^T positional term (no Transformer-XL relative shift).
    r = (R @ params["wr"]).astype(jnp.float32)                     # (Skv, D)

    bf = lambda w: w.astype(jnp.bfloat16)                          # bf16 matmul inputs

    def batched(shape):                                            # per-batch slice
        nd = len(shape)
        return pl.BlockSpec(shape, lambda b, _nd=nd: (b,) + (0,) * (_nd - 1))

    def const(shape):                                              # VMEM-resident constant
        nd = len(shape)
        return pl.BlockSpec(shape, lambda b, _nd=nd: (0,) * _nd)

    in_arrays = [
        x, h, bias, r,
        bf(params["wq"]), params["bq"], bf(params["wk"]), params["bk"],
        bf(params["wv"]), params["bv"], bf(params["wo"]), params["bo"],
        params["ln2_w"], params["ln2_b"],
        bf(params["w1"]), params["b1"], bf(params["w2"]), params["b2"],
        params["fln_w"], params["fln_b"],
    ]
    in_specs = ([batched((1, Sq, D)), batched((1, Skv, D)),
                 batched((1, Sq, Skv)), const((Skv, D))]
                + [const(a.shape) for a in in_arrays[4:]])

    out, dots = pl.pallas_call(
        encoder_layer_kernel,
        grid=(B,),                              # batch on the grid, parallel across TCs
        in_specs=in_specs,
        out_specs=(batched((1, Sq, D)), batched((1, H, Sq, Skv))),
        out_shape=(jax.ShapeDtypeStruct((B, Sq, D), jnp.float32),
                   jax.ShapeDtypeStruct((B, H, Sq, Skv), jnp.float32)),
        compiler_params=pltpu.CompilerParams(dimension_semantics=("parallel",)),
    )(*in_arrays)
    return out, dots


def _reference(x, mem, c_mem, mask, R, p):
    """Pure-JAX reference of the same forward (for correctness check)."""
    h = jnp.concatenate([c_mem, mem, x], axis=1)
    q = x @ p["wq"] + p["bq"]
    k = h @ p["wk"] + p["bk"]
    v = h @ p["wv"] + p["bv"]
    r = R @ p["wr"]
    B, Sq, D = x.shape
    Skv = h.shape[1]
    qh = q.reshape(B, Sq, NUM_HEADS, DIM_HEAD).transpose(0, 2, 1, 3)
    kh = k.reshape(B, Skv, NUM_HEADS, DIM_HEAD).transpose(0, 2, 1, 3)
    vh = v.reshape(B, Skv, NUM_HEADS, DIM_HEAD).transpose(0, 2, 1, 3)
    rh = r.reshape(Skv, NUM_HEADS, DIM_HEAD).transpose(1, 0, 2)
    scores = (jnp.einsum("bhqd,bhkd->bhqk", qh, kh)
              + jnp.einsum("bhqd,hkd->bhqk", qh, rh)) / math.sqrt(DIM_HEAD)
    scores = jnp.where(mask[:, None, :, :] > 0, scores, -1e9)
    dots = jax.nn.softmax(scores, axis=-1)
    o = jnp.einsum("bhqk,bhkd->bhqd", dots, vh).transpose(0, 2, 1, 3).reshape(B, Sq, D)
    o = o @ p["wo"] + p["bo"]

    def ln(t, w, b):
        mu = jnp.mean(t, axis=-1, keepdims=True)
        var = jnp.mean((t - mu) ** 2, axis=-1, keepdims=True)
        return (t - mu) / jnp.sqrt(var + EPS) * w + b

    y = ln(o + x, p["ln2_w"], p["ln2_b"])
    hdn = y @ p["w1"] + p["b1"]
    hdn = hdn * jax.nn.sigmoid(hdn)
    ff = hdn @ p["w2"] + p["b2"]
    out = ln(ff + y, p["fln_w"], p["fln_b"])
    return out, dots


if __name__ == "__main__":
    key = jax.random.PRNGKey(0)
    B, Sq, Sm, Sc, D = 2, 8, 8, 8, DIM_MODEL
    Skv = Sc + Sm + Sq

    keys = jax.random.split(key, 16)
    x = jax.random.normal(keys[0], (B, Sq, D), jnp.float32)
    mem = jax.random.normal(keys[1], (B, Sm, D), jnp.float32)
    c_mem = jax.random.normal(keys[2], (B, Sc, D), jnp.float32)
    R = jax.random.normal(keys[3], (Skv, D), jnp.float32) * 0.02

    # mask: 1 = attend. Memories fully visible; causal over the x segment.
    q_idx = jnp.arange(Sq)[:, None]
    k_idx = jnp.arange(Skv)[None, :]
    mask2d = (k_idx < (Sc + Sm) + q_idx + 1).astype(jnp.int32)
    mask = jnp.broadcast_to(mask2d, (B, Sq, Skv))

    def lin(k, fan_in, fan_out):
        return jax.random.normal(k, (fan_in, fan_out), jnp.float32) * 0.02

    params = {
        "wq": lin(keys[4], D, D), "bq": jnp.zeros((1, D), jnp.float32),
        "wk": lin(keys[5], D, D), "bk": jnp.zeros((1, D), jnp.float32),
        "wv": lin(keys[6], D, D), "bv": jnp.zeros((1, D), jnp.float32),
        "wr": lin(keys[7], D, D),
        "wo": lin(keys[8], D, D), "bo": jnp.zeros((1, D), jnp.float32),
        "ln2_w": jnp.ones((1, D), jnp.float32), "ln2_b": jnp.zeros((1, D), jnp.float32),
        "w1": lin(keys[9], D, DIM_INNER), "b1": jnp.zeros((1, DIM_INNER), jnp.float32),
        "w2": lin(keys[10], DIM_INNER, D), "b2": jnp.zeros((1, D), jnp.float32),
        "fln_w": jnp.ones((1, D), jnp.float32), "fln_b": jnp.zeros((1, D), jnp.float32),
    }

    out, dots = encoder_layer(x, mem, c_mem, mask, R, params)
    out = jax.block_until_ready(out)
    dots = jax.block_until_ready(dots)

    # Gold reference at full f32 matmul precision. The kernel uses bf16 matmul
    # inputs with f32 accumulation, so tolerances are sized for bf16 input rounding.
    with jax.default_matmul_precision("highest"):
        ref_out, ref_dots = _reference(x, mem, c_mem, mask, R, params)

    assert out.shape == (B, Sq, D) and dots.shape == (B, NUM_HEADS, Sq, Skv)
    assert jnp.allclose(dots, ref_dots, atol=2e-3, rtol=2e-3)
    assert jnp.allclose(out, ref_out, atol=3e-3, rtol=3e-3)

    print("KERNEL_OK")
</pallas_src>

<mosaic_0001>
module attributes {stable_mosaic.version = 11 : i64} {
  func.func @encoder_layer_kernel(%arg0: i32, %arg1: memref<1x8x32xf32, #tpu.memory_space<vmem>>, %arg2: memref<1x24x32xf32, #tpu.memory_space<vmem>>, %arg3: memref<1x8x24xf32, #tpu.memory_space<vmem>>, %arg4: memref<24x32xf32, #tpu.memory_space<vmem>>, %arg5: memref<32x32xbf16, #tpu.memory_space<vmem>>, %arg6: memref<1x32xf32, #tpu.memory_space<vmem>>, %arg7: memref<32x32xbf16, #tpu.memory_space<vmem>>, %arg8: memref<1x32xf32, #tpu.memory_space<vmem>>, %arg9: memref<32x32xbf16, #tpu.memory_space<vmem>>, %arg10: memref<1x32xf32, #tpu.memory_space<vmem>>, %arg11: memref<32x32xbf16, #tpu.memory_space<vmem>>, %arg12: memref<1x32xf32, #tpu.memory_space<vmem>>, %arg13: memref<1x32xf32, #tpu.memory_space<vmem>>, %arg14: memref<1x32xf32, #tpu.memory_space<vmem>>, %arg15: memref<32x64xbf16, #tpu.memory_space<vmem>>, %arg16: memref<1x64xf32, #tpu.memory_space<vmem>>, %arg17: memref<64x32xbf16, #tpu.memory_space<vmem>>, %arg18: memref<1x32xf32, #tpu.memory_space<vmem>>, %arg19: memref<1x32xf32, #tpu.memory_space<vmem>>, %arg20: memref<1x32xf32, #tpu.memory_space<vmem>>, %arg21: memref<1x8x32xf32, #tpu.memory_space<vmem>>, %arg22: memref<1x4x8x24xf32, #tpu.memory_space<vmem>>) attributes {dimension_semantics = [#tpu.dimension_semantics<parallel>], iteration_bounds = array<i64: 2>, scalar_prefetch = 0 : i64, scratch_operands = 0 : i64, tpu.core_type = #tpu.core_type<tc>, window_params = [{transform_indices = @transform_0, window_bounds = array<i64: 1, 8, 32>}, {transform_indices = @transform_1, window_bounds = array<i64: 1, 24, 32>}, {transform_indices = @transform_2, window_bounds = array<i64: 1, 8, 24>}, {pipeline_mode = #tpu.pipeline_mode<synchronous>, transform_indices = @transform_3, window_bounds = array<i64: 24, 32>}, {pipeline_mode = #tpu.pipeline_mode<synchronous>, transform_indices = @transform_4, window_bounds = array<i64: 32, 32>}, {pipeline_mode = #tpu.pipeline_mode<synchronous>, transform_indices = @transform_5, window_bounds = array<i64: 1, 32>}, {pipeline_mode = #tpu.pipeline_mode<synchronous>, transform_indices = @transform_6, window_bounds = array<i64: 32, 32>}, {pipeline_mode = #tpu.pipeline_mode<synchronous>, transform_indices = @transform_7, window_bounds = array<i64: 1, 32>}, {pipeline_mode = #tpu.pipeline_mode<synchronous>, transform_indices = @transform_8, window_bounds = array<i64: 32, 32>}, {pipeline_mode = #tpu.pipeline_mode<synchronous>, transform_indices = @transform_9, window_bounds = array<i64: 1, 32>}, {pipeline_mode = #tpu.pipeline_mode<synchronous>, transform_indices = @transform_10, window_bounds = array<i64: 32, 32>}, {pipeline_mode = #tpu.pipeline_mode<synchronous>, transform_indices = @transform_11, window_bounds = array<i64: 1, 32>}, {pipeline_mode = #tpu.pipeline_mode<synchronous>, transform_indices = @transform_12, window_bounds = array<i64: 1, 32>}, {pipeline_mode = #tpu.pipeline_mode<synchronous>, transform_indices = @transform_13, window_bounds = array<i64: 1, 32>}, {pipeline_mode = #tpu.pipeline_mode<synchronous>, transform_indices = @transform_14, window_bounds = array<i64: 32, 64>}, {pipeline_mode = #tpu.pipeline_mode<synchronous>, transform_indices = @transform_15, window_bounds = array<i64: 1, 64>}, {pipeline_mode = #tpu.pipeline_mode<synchronous>, transform_indices = @transform_16, window_bounds = array<i64: 64, 32>}, {pipeline_mode = #tpu.pipeline_mode<synchronous>, transform_indices = @transform_17, window_bounds = array<i64: 1, 32>}, {pipeline_mode = #tpu.pipeline_mode<synchronous>, transform_indices = @transform_18, window_bounds = array<i64: 1, 32>}, {pipeline_mode = #tpu.pipeline_mode<synchronous>, transform_indices = @transform_19, window_bounds = array<i64: 1, 32>}, {transform_indices = @transform_20, window_bounds = array<i64: 1, 8, 32>}, {transform_indices = @transform_21, window_bounds = array<i64: 1, 4, 8, 24>}]} {
    %c0 = arith.constant 0 : index
    %c0_0 = arith.constant 0 : index
    %c0_1 = arith.constant 0 : index
    %0 = vector.load %arg1[%c0, %c0_0, %c0_1] : memref<1x8x32xf32, #tpu.memory_space<vmem>>, vector<1x8x32xf32>
    %1 = vector.shape_cast %0 : vector<1x8x32xf32> to vector<8x32xf32>
    %c0_2 = arith.constant 0 : index
    %c0_3 = arith.constant 0 : index
    %c0_4 = arith.constant 0 : index
    %2 = vector.load %arg2[%c0_2, %c0_3, %c0_4] : memref<1x24x32xf32, #tpu.memory_space<vmem>>, vector<1x24x32xf32>
    %3 = vector.shape_cast %2 : vector<1x24x32xf32> to vector<24x32xf32>
    %c0_5 = arith.constant 0 : index
    %c0_6 = arith.constant 0 : index
    %c0_7 = arith.constant 0 : index
    %4 = vector.load %arg3[%c0_5, %c0_6, %c0_7] : memref<1x8x24xf32, #tpu.memory_space<vmem>>, vector<1x8x24xf32>
    %5 = vector.shape_cast %4 : vector<1x8x24xf32> to vector<8x24xf32>
    %6 = arith.truncf %1 : vector<8x32xf32> to vector<8x32xbf16>
    %7 = arith.truncf %3 : vector<24x32xf32> to vector<24x32xbf16>
    %c0_8 = arith.constant 0 : index
    %c0_9 = arith.constant 0 : index
    %8 = vector.load %arg5[%c0_8, %c0_9] : memref<32x32xbf16, #tpu.memory_space<vmem>>, vector<32x32xbf16>
    %cst = arith.constant dense<0.000000e+00> : vector<8x32xf32>
    %9 = tpu.matmul %6, %8, %cst {dimension_numbers = #tpu.dot_dimension_numbers<[1], [0], [0], [1], [0, 0, 1, 1], [], []>} : vector<8x32xbf16>, vector<32x32xbf16>, vector<8x32xf32> -> vector<8x32xf32>
    %c0_10 = arith.constant 0 : index
    %c0_11 = arith.constant 0 : index
    %10 = vector.load %arg6[%c0_10, %c0_11] : memref<1x32xf32, #tpu.memory_space<vmem>>, vector<1x32xf32>
    %11 = vector.broadcast %10 : vector<1x32xf32> to vector<8x32xf32>
    %12 = arith.addf %9, %11 : vector<8x32xf32>
    %c0_12 = arith.constant 0 : index
    %c0_13 = arith.constant 0 : index
    %13 = vector.load %arg7[%c0_12, %c0_13] : memref<32x32xbf16, #tpu.memory_space<vmem>>, vector<32x32xbf16>
    %cst_14 = arith.constant dense<0.000000e+00> : vector<24x32xf32>
    %14 = tpu.matmul %7, %13, %cst_14 {dimension_numbers = #tpu.dot_dimension_numbers<[1], [0], [0], [1], [0, 0, 1, 1], [], []>} : vector<24x32xbf16>, vector<32x32xbf16>, vector<24x32xf32> -> vector<24x32xf32>
    %c0_15 = arith.constant 0 : index
    %c0_16 = arith.constant 0 : index
    %15 = vector.load %arg8[%c0_15, %c0_16] : memref<1x32xf32, #tpu.memory_space<vmem>>, vector<1x32xf32>
    %16 = vector.broadcast %15 : vector<1x32xf32> to vector<24x32xf32>
    %17 = arith.addf %14, %16 : vector<24x32xf32>
    %c0_17 = arith.constant 0 : index
    %c0_18 = arith.constant 0 : index
    %18 = vector.load %arg4[%c0_17, %c0_18] : memref<24x32xf32, #tpu.memory_space<vmem>>, vector<24x32xf32>
    %19 = arith.addf %17, %18 : vector<24x32xf32>
    %c0_19 = arith.constant 0 : index
    %c0_20 = arith.constant 0 : index
    %20 = vector.load %arg9[%c0_19, %c0_20] : memref<32x32xbf16, #tpu.memory_space<vmem>>, vector<32x32xbf16>
    %cst_21 = arith.constant dense<0.000000e+00> : vector<24x32xf32>
    %21 = tpu.matmul %7, %20, %cst_21 {dimension_numbers = #tpu.dot_dimension_numbers<[1], [0], [0], [1], [0, 0, 1, 1], [], []>} : vector<24x32xbf16>, vector<32x32xbf16>, vector<24x32xf32> -> vector<24x32xf32>
    %c0_22 = arith.constant 0 : index
    %c0_23 = arith.constant 0 : index
    %22 = vector.load %arg10[%c0_22, %c0_23] : memref<1x32xf32, #tpu.memory_space<vmem>>, vector<1x32xf32>
    %23 = vector.broadcast %22 : vector<1x32xf32> to vector<24x32xf32>
    %24 = arith.addf %21, %23 : vector<24x32xf32>
    %25 = vector.shape_cast %12 : vector<8x32xf32> to vector<8x4x8xf32>
    %26 = tpu.transpose %25, [1, 0, 2] : vector<8x4x8xf32> -> vector<4x8x8xf32>
    %27 = arith.truncf %26 : vector<4x8x8xf32> to vector<4x8x8xbf16>
    %28 = vector.shape_cast %19 : vector<24x32xf32> to vector<24x4x8xf32>
    %29 = tpu.transpose %28, [1, 0, 2] : vector<24x4x8xf32> -> vector<4x24x8xf32>
    %30 = arith.truncf %29 : vector<4x24x8xf32> to vector<4x24x8xbf16>
    %31 = vector.shape_cast %24 : vector<24x32xf32> to vector<24x4x8xf32>
    %32 = tpu.transpose %31, [1, 0, 2] : vector<24x4x8xf32> -> vector<4x24x8xf32>
    %33 = arith.truncf %32 : vector<4x24x8xf32> to vector<4x24x8xbf16>
    "tpu.trace_start"() <{level = 10 : i32, message = "hqd,hkd->hqk"}> : () -> ()
    %cst_24 = arith.constant dense<0.000000e+00> : vector<4x8x24xf32>
    %34 = tpu.matmul %27, %30, %cst_24 {dimension_numbers = #tpu.dot_dimension_numbers<[2], [2], [1], [1], [0, 0, 0, 1, 1, 1], [0], [0]>} : vector<4x8x8xbf16>, vector<4x24x8xbf16>, vector<4x8x24xf32> -> vector<4x8x24xf32>
    "tpu.trace_stop"() : () -> ()
    %cst_25 = arith.constant 0.353553385 : f32
    %35 = vector.broadcast %cst_25 : f32 to vector<4x8x24xf32>
    %36 = arith.mulf %34, %35 : vector<4x8x24xf32>
    %37 = vector.shape_cast %5 : vector<8x24xf32> to vector<1x8x24xf32>
    %38 = vector.broadcast %37 : vector<1x8x24xf32> to vector<4x8x24xf32>
    %39 = arith.addf %36, %38 : vector<4x8x24xf32>
    %cst_26 = arith.constant dense<0xFF800000> : vector<4x8xf32>
    %40 = vector.multi_reduction <maximumf>, %39, %cst_26 [2] : vector<4x8x24xf32> to vector<4x8xf32>
    %41 = vector.shape_cast %40 : vector<4x8xf32> to vector<4x8x1xf32>
    %42 = vector.broadcast %41 : vector<4x8x1xf32> to vector<4x8x24xf32>
    %43 = arith.subf %39, %42 : vector<4x8x24xf32>
    %44 = math.exp %43 : vector<4x8x24xf32>
    %cst_27 = arith.constant dense<0.000000e+00> : vector<4x8xf32>
    %45 = vector.multi_reduction <add>, %44, %cst_27 [2] : vector<4x8x24xf32> to vector<4x8xf32>
    %46 = vector.shape_cast %45 : vector<4x8xf32> to vector<4x8x1xf32>
    %47 = tpu.reciprocal %46 {approx = true} : vector<4x8x1xf32> -> vector<4x8x1xf32>
    %48 = arith.mulf %46, %47 : vector<4x8x1xf32>
    %cst_28 = arith.constant 2.000000e+00 : f32
    %49 = vector.broadcast %cst_28 : f32 to vector<4x8x1xf32>
    %50 = arith.subf %49, %48 : vector<4x8x1xf32>
    %51 = arith.mulf %47, %50 : vector<4x8x1xf32>
    %52 = vector.broadcast %51 : vector<4x8x1xf32> to vector<4x8x24xf32>
    %53 = arith.mulf %44, %52 : vector<4x8x24xf32>
    %c0_29 = arith.constant 0 : index
    %c0_30 = arith.constant 0 : index
    %c0_31 = arith.constant 0 : index
    %c0_32 = arith.constant 0 : index
    %54 = vector.load %arg22[%c0_29, %c0_30, %c0_31, %c0_32] : memref<1x4x8x24xf32, #tpu.memory_space<vmem>>, vector<1x4x8x24xf32>
    %55 = vector.shape_cast %54 : vector<1x4x8x24xf32> to vector<4x8x24xf32>
    %56 = vector.shape_cast %53 : vector<4x8x24xf32> to vector<1x4x8x24xf32>
    tpu.vector_store %arg22[%c0_29, %c0_30, %c0_31, %c0_32], %56 {strides = array<i32>} : memref<1x4x8x24xf32, #tpu.memory_space<vmem>>, vector<1x4x8x24xf32>,
    %57 = arith.truncf %53 : vector<4x8x24xf32> to vector<4x8x24xbf16>
    "tpu.trace_start"() <{level = 10 : i32, message = "hqk,hkd->hqd"}> : () -> ()
    %cst_33 = arith.constant dense<0.000000e+00> : vector<4x8x8xf32>
    %58 = tpu.matmul %57, %33, %cst_33 {dimension_numbers = #tpu.dot_dimension_numbers<[2], [1], [1], [2], [0, 0, 0, 1, 1, 2], [0], [0]>} : vector<4x8x24xbf16>, vector<4x24x8xbf16>, vector<4x8x8xf32> -> vector<4x8x8xf32>
    "tpu.trace_stop"() : () -> ()
    %59 = tpu.transpose %58, [1, 0, 2] : vector<4x8x8xf32> -> vector<8x4x8xf32>
    %60 = vector.shape_cast %59 : vector<8x4x8xf32> to vector<8x32xf32>
    %61 = arith.truncf %60 : vector<8x32xf32> to vector<8x32xbf16>
    %c0_34 = arith.constant 0 : index
    %c0_35 = arith.constant 0 : index
    %62 = vector.load %arg11[%c0_34, %c0_35] : memref<32x32xbf16, #tpu.memory_space<vmem>>, vector<32x32xbf16>
    %cst_36 = arith.constant dense<0.000000e+00> : vector<8x32xf32>
    %63 = tpu.matmul %61, %62, %cst_36 {dimension_numbers = #tpu.dot_dimension_numbers<[1], [0], [0], [1], [0, 0, 1, 1], [], []>} : vector<8x32xbf16>, vector<32x32xbf16>, vector<8x32xf32> -> vector<8x32xf32>
    %c0_37 = arith.constant 0 : index
    %c0_38 = arith.constant 0 : index
    %64 = vector.load %arg12[%c0_37, %c0_38] : memref<1x32xf32, #tpu.memory_space<vmem>>, vector<1x32xf32>
    %65 = vector.broadcast %64 : vector<1x32xf32> to vector<8x32xf32>
    %66 = arith.addf %63, %65 : vector<8x32xf32>
    %67 = arith.addf %66, %1 : vector<8x32xf32>
    %c0_39 = arith.constant 0 : index
    %c0_40 = arith.constant 0 : index
    %68 = vector.load %arg13[%c0_39, %c0_40] : memref<1x32xf32, #tpu.memory_space<vmem>>, vector<1x32xf32>
    %c0_41 = arith.constant 0 : index
    %c0_42 = arith.constant 0 : index
    %69 = vector.load %arg14[%c0_41, %c0_42] : memref<1x32xf32, #tpu.memory_space<vmem>>, vector<1x32xf32>
    %cst_43 = arith.constant dense<0.000000e+00> : vector<8xf32>
    %70 = vector.multi_reduction <add>, %67, %cst_43 [1] : vector<8x32xf32> to vector<8xf32>
    %71 = vector.shape_cast %70 : vector<8xf32> to vector<8x1xf32>
    %cst_44 = arith.constant 3.200000e+01 : f32
    %72 = vector.broadcast %cst_44 : f32 to vector<8x1xf32>
    %73 = arith.divf %71, %72 : vector<8x1xf32>
    %74 = vector.broadcast %73 : vector<8x1xf32> to vector<8x32xf32>
    %75 = arith.subf %67, %74 : vector<8x32xf32>
    %76 = arith.mulf %75, %75 : vector<8x32xf32>
    %cst_45 = arith.constant dense<0.000000e+00> : vector<8xf32>
    %77 = vector.multi_reduction <add>, %76, %cst_45 [1] : vector<8x32xf32> to vector<8xf32>
    %78 = vector.shape_cast %77 : vector<8xf32> to vector<8x1xf32>
    %cst_46 = arith.constant 3.200000e+01 : f32
    %79 = vector.broadcast %cst_46 : f32 to vector<8x1xf32>
    %80 = arith.divf %78, %79 : vector<8x1xf32>
    %81 = vector.broadcast %73 : vector<8x1xf32> to vector<8x32xf32>
    %82 = arith.subf %67, %81 : vector<8x32xf32>
    %cst_47 = arith.constant 9.99999974E-6 : f32
    %83 = vector.broadcast %cst_47 : f32 to vector<8x1xf32>
    %84 = arith.addf %80, %83 : vector<8x1xf32>
    %85 = math.rsqrt %84 : vector<8x1xf32>
    %86 = vector.broadcast %85 : vector<8x1xf32> to vector<8x32xf32>
    %87 = arith.mulf %82, %86 : vector<8x32xf32>
    %88 = vector.broadcast %68 : vector<1x32xf32> to vector<8x32xf32>
    %89 = arith.mulf %87, %88 : vector<8x32xf32>
    %90 = vector.broadcast %69 : vector<1x32xf32> to vector<8x32xf32>
    %91 = arith.addf %89, %90 : vector<8x32xf32>
    %92 = arith.truncf %91 : vector<8x32xf32> to vector<8x32xbf16>
    %c0_48 = arith.constant 0 : index
    %c0_49 = arith.constant 0 : index
    %93 = vector.load %arg15[%c0_48, %c0_49] : memref<32x64xbf16, #tpu.memory_space<vmem>>, vector<32x64xbf16>
    %cst_50 = arith.constant dense<0.000000e+00> : vector<8x64xf32>
    %94 = tpu.matmul %92, %93, %cst_50 {dimension_numbers = #tpu.dot_dimension_numbers<[1], [0], [0], [1], [0, 0, 1, 1], [], []>} : vector<8x32xbf16>, vector<32x64xbf16>, vector<8x64xf32> -> vector<8x64xf32>
    %c0_51 = arith.constant 0 : index
    %c0_52 = arith.constant 0 : index
    %95 = vector.load %arg16[%c0_51, %c0_52] : memref<1x64xf32, #tpu.memory_space<vmem>>, vector<1x64xf32>
    %96 = vector.broadcast %95 : vector<1x64xf32> to vector<8x64xf32>
    %97 = arith.addf %94, %96 : vector<8x64xf32>
    %98 = arith.negf %97 : vector<8x64xf32>
    %99 = math.exp %98 : vector<8x64xf32>
    %cst_53 = arith.constant 1.000000e+00 : f32
    %100 = vector.broadcast %cst_53 : f32 to vector<8x64xf32>
    %101 = arith.addf %100, %99 : vector<8x64xf32>
    %102 = arith.divf %100, %101 : vector<8x64xf32>
    %103 = arith.mulf %97, %102 : vector<8x64xf32>
    %104 = arith.truncf %103 : vector<8x64xf32> to vector<8x64xbf16>
    %c0_54 = arith.constant 0 : index
    %c0_55 = arith.constant 0 : index
    %105 = vector.load %arg17[%c0_54, %c0_55] : memref<64x32xbf16, #tpu.memory_space<vmem>>, vector<64x32xbf16>
    %cst_56 = arith.constant dense<0.000000e+00> : vector<8x32xf32>
    %106 = tpu.matmul %104, %105, %cst_56 {dimension_numbers = #tpu.dot_dimension_numbers<[1], [0], [0], [1], [0, 0, 1, 1], [], []>} : vector<8x64xbf16>, vector<64x32xbf16>, vector<8x32xf32> -> vector<8x32xf32>
    %c0_57 = arith.constant 0 : index
    %c0_58 = arith.constant 0 : index
    %107 = vector.load %arg18[%c0_57, %c0_58] : memref<1x32xf32, #tpu.memory_space<vmem>>, vector<1x32xf32>
    %108 = vector.broadcast %107 : vector<1x32xf32> to vector<8x32xf32>
    %109 = arith.addf %106, %108 : vector<8x32xf32>
    %110 = arith.addf %109, %91 : vector<8x32xf32>
    %c0_59 = arith.constant 0 : index
    %c0_60 = arith.constant 0 : index
    %111 = vector.load %arg19[%c0_59, %c0_60] : memref<1x32xf32, #tpu.memory_space<vmem>>, vector<1x32xf32>
    %c0_61 = arith.constant 0 : index
    %c0_62 = arith.constant 0 : index
    %112 = vector.load %arg20[%c0_61, %c0_62] : memref<1x32xf32, #tpu.memory_space<vmem>>, vector<1x32xf32>
    %cst_63 = arith.constant dense<0.000000e+00> : vector<8xf32>
    %113 = vector.multi_reduction <add>, %110, %cst_63 [1] : vector<8x32xf32> to vector<8xf32>
    %114 = vector.shape_cast %113 : vector<8xf32> to vector<8x1xf32>
    %cst_64 = arith.constant 3.200000e+01 : f32
    %115 = vector.broadcast %cst_64 : f32 to vector<8x1xf32>
    %116 = arith.divf %114, %115 : vector<8x1xf32>
    %117 = vector.broadcast %116 : vector<8x1xf32> to vector<8x32xf32>
    %118 = arith.subf %110, %117 : vector<8x32xf32>
    %119 = arith.mulf %118, %118 : vector<8x32xf32>
    %cst_65 = arith.constant dense<0.000000e+00> : vector<8xf32>
    %120 = vector.multi_reduction <add>, %119, %cst_65 [1] : vector<8x32xf32> to vector<8xf32>
    %121 = vector.shape_cast %120 : vector<8xf32> to vector<8x1xf32>
    %cst_66 = arith.constant 3.200000e+01 : f32
    %122 = vector.broadcast %cst_66 : f32 to vector<8x1xf32>
    %123 = arith.divf %121, %122 : vector<8x1xf32>
    %124 = vector.broadcast %116 : vector<8x1xf32> to vector<8x32xf32>
    %125 = arith.subf %110, %124 : vector<8x32xf32>
    %cst_67 = arith.constant 9.99999974E-6 : f32
    %126 = vector.broadcast %cst_67 : f32 to vector<8x1xf32>
    %127 = arith.addf %123, %126 : vector<8x1xf32>
    %128 = math.rsqrt %127 : vector<8x1xf32>
    %129 = vector.broadcast %128 : vector<8x1xf32> to vector<8x32xf32>
    %130 = arith.mulf %125, %129 : vector<8x32xf32>
    %131 = vector.broadcast %111 : vector<1x32xf32> to vector<8x32xf32>
    %132 = arith.mulf %130, %131 : vector<8x32xf32>
    %133 = vector.broadcast %112 : vector<1x32xf32> to vector<8x32xf32>
    %134 = arith.addf %132, %133 : vector<8x32xf32>
    %c0_68 = arith.constant 0 : index
    %c0_69 = arith.constant 0 : index
    %c0_70 = arith.constant 0 : index
    %135 = vector.load %arg21[%c0_68, %c0_69, %c0_70] : memref<1x8x32xf32, #tpu.memory_space<vmem>>, vector<1x8x32xf32>
    %136 = vector.shape_cast %135 : vector<1x8x32xf32> to vector<8x32xf32>
    %137 = vector.shape_cast %134 : vector<8x32xf32> to vector<1x8x32xf32>
    tpu.vector_store %arg21[%c0_68, %c0_69, %c0_70], %137 {strides = array<i32>} : memref<1x8x32xf32, #tpu.memory_space<vmem>>, vector<1x8x32xf32>,
    return
  }
  func.func @transform_0(%arg0: i32) -> (i32, i32, i32) {
    %c0_i32 = arith.constant 0 : i32
    %c0_i32_0 = arith.constant 0 : i32
    %c0_i32_1 = arith.constant 0 : i32
    return %arg0, %c0_i32, %c0_i32_0 : i32, i32, i32
  }
  func.func @transform_1(%arg0: i32) -> (i32, i32, i32) {
    %c0_i32 = arith.constant 0 : i32
    %c0_i32_0 = arith.constant 0 : i32
    %c0_i32_1 = arith.constant 0 : i32
    return %arg0, %c0_i32, %c0_i32_0 : i32, i32, i32
  }
  func.func @transform_2(%arg0: i32) -> (i32, i32, i32) {
    %c0_i32 = arith.constant 0 : i32
    %c0_i32_0 = arith.constant 0 : i32
    %c0_i32_1 = arith.constant 0 : i32
    return %arg0, %c0_i32, %c0_i32_0 : i32, i32, i32
  }
  func.func @transform_3(%arg0: i32) -> (i32, i32) {
    %c0_i32 = arith.constant 0 : i32
    %c0_i32_0 = arith.constant 0 : i32
    %c0_i32_1 = arith.constant 0 : i32
    return %c0_i32, %c0_i32_0 : i32, i32
  }
  func.func @transform_4(%arg0: i32) -> (i32, i32) {
    %c0_i32 = arith.constant 0 : i32
    %c0_i32_0 = arith.constant 0 : i32
    %c0_i32_1 = arith.constant 0 : i32
    return %c0_i32, %c0_i32_0 : i32, i32
  }
  func.func @transform_5(%arg0: i32) -> (i32, i32) {
    %c0_i32 = arith.constant 0 : i32
    %c0_i32_0 = arith.constant 0 : i32
    %c0_i32_1 = arith.constant 0 : i32
    return %c0_i32, %c0_i32_0 : i32, i32
  }
  func.func @transform_6(%arg0: i32) -> (i32, i32) {
    %c0_i32 = arith.constant 0 : i32
    %c0_i32_0 = arith.constant 0 : i32
    %c0_i32_1 = arith.constant 0 : i32
    return %c0_i32, %c0_i32_0 : i32, i32
  }
  func.func @transform_7(%arg0: i32) -> (i32, i32) {
    %c0_i32 = arith.constant 0 : i32
    %c0_i32_0 = arith.constant 0 : i32
    %c0_i32_1 = arith.constant 0 : i32
    return %c0_i32, %c0_i32_0 : i32, i32
  }
  func.func @transform_8(%arg0: i32) -> (i32, i32) {
    %c0_i32 = arith.constant 0 : i32
    %c0_i32_0 = arith.constant 0 : i32
    %c0_i32_1 = arith.constant 0 : i32
    return %c0_i32, %c0_i32_0 : i32, i32
  }
  func.func @transform_9(%arg0: i32) -> (i32, i32) {
    %c0_i32 = arith.constant 0 : i32
    %c0_i32_0 = arith.constant 0 : i32
    %c0_i32_1 = arith.constant 0 : i32
    return %c0_i32, %c0_i32_0 : i32, i32
  }
  func.func @transform_10(%arg0: i32) -> (i32, i32) {
    %c0_i32 = arith.constant 0 : i32
    %c0_i32_0 = arith.constant 0 : i32
    %c0_i32_1 = arith.constant 0 : i32
    return %c0_i32, %c0_i32_0 : i32, i32
  }
  func.func @transform_11(%arg0: i32) -> (i32, i32) {
    %c0_i32 = arith.constant 0 : i32
    %c0_i32_0 = arith.constant 0 : i32
    %c0_i32_1 = arith.constant 0 : i32
    return %c0_i32, %c0_i32_0 : i32, i32
  }
  func.func @transform_12(%arg0: i32) -> (i32, i32) {
    %c0_i32 = arith.constant 0 : i32
    %c0_i32_0 = arith.constant 0 : i32
    %c0_i32_1 = arith.constant 0 : i32
    return %c0_i32, %c0_i32_0 : i32, i32
  }
  func.func @transform_13(%arg0: i32) -> (i32, i32) {
    %c0_i32 = arith.constant 0 : i32
    %c0_i32_0 = arith.constant 0 : i32
    %c0_i32_1 = arith.constant 0 : i32
    return %c0_i32, %c0_i32_0 : i32, i32
  }
  func.func @transform_14(%arg0: i32) -> (i32, i32) {
    %c0_i32 = arith.constant 0 : i32
    %c0_i32_0 = arith.constant 0 : i32
    %c0_i32_1 = arith.constant 0 : i32
    return %c0_i32, %c0_i32_0 : i32, i32
  }
  func.func @transform_15(%arg0: i32) -> (i32, i32) {
    %c0_i32 = arith.constant 0 : i32
    %c0_i32_0 = arith.constant 0 : i32
    %c0_i32_1 = arith.constant 0 : i32
    return %c0_i32, %c0_i32_0 : i32, i32
  }
  func.func @transform_16(%arg0: i32) -> (i32, i32) {
    %c0_i32 = arith.constant 0 : i32
    %c0_i32_0 = arith.constant 0 : i32
    %c0_i32_1 = arith.constant 0 : i32
    return %c0_i32, %c0_i32_0 : i32, i32
  }
  func.func @transform_17(%arg0: i32) -> (i32, i32) {
    %c0_i32 = arith.constant 0 : i32
    %c0_i32_0 = arith.constant 0 : i32
    %c0_i32_1 = arith.constant 0 : i32
    return %c0_i32, %c0_i32_0 : i32, i32
  }
  func.func @transform_18(%arg0: i32) -> (i32, i32) {
    %c0_i32 = arith.constant 0 : i32
    %c0_i32_0 = arith.constant 0 : i32
    %c0_i32_1 = arith.constant 0 : i32
    return %c0_i32, %c0_i32_0 : i32, i32
  }
  func.func @transform_19(%arg0: i32) -> (i32, i32) {
    %c0_i32 = arith.constant 0 : i32
    %c0_i32_0 = arith.constant 0 : i32
    %c0_i32_1 = arith.constant 0 : i32
    return %c0_i32, %c0_i32_0 : i32, i32
  }
  func.func @transform_20(%arg0: i32) -> (i32, i32, i32) {
    %c0_i32 = arith.constant 0 : i32
    %c0_i32_0 = arith.constant 0 : i32
    %c0_i32_1 = arith.constant 0 : i32
    return %arg0, %c0_i32, %c0_i32_0 : i32, i32, i32
  }
  func.func @transform_21(%arg0: i32) -> (i32, i32, i32, i32) {
    %c0_i32 = arith.constant 0 : i32
    %c0_i32_0 = arith.constant 0 : i32
    %c0_i32_1 = arith.constant 0 : i32
    %c0_i32_2 = arith.constant 0 : i32
    return %arg0, %c0_i32, %c0_i32_0, %c0_i32_1 : i32, i32, i32, i32
  }
}

</mosaic_0001>

<bundles_post_ra>
// kernel: tpu_custom_call.1
= control target key start
LH: loop header
LB: loop body
LE: loop exit
PB: predicated region body
PF: predicated region fallthrough
CT: control target
= control target key end

     0   :  { %s4847_s0 = inlined_call_operand.hbm [shape: f32[2,8,32], index: 0, kind: input, shape index: {}]   ;;  %s4848_s1 = inlined_call_operand.vmem [shape: f32[2,24,32], index: 1, kind: input, shape index: {}]   ;;  %s4849_s2 = inlined_call_operand.hbm [shape: f32[2,8,24], index: 2, kind: input, shape index: {}]   ;;  %s4850_s3 = inlined_call_operand.hbm [shape: f32[24,32], index: 3, kind: input, shape index: {}]   ;;  %s4851_s4 = inlined_call_operand.hbm [shape: bf16[32,32], index: 4, kind: input, shape index: {}]   ;;  %s4852_s5 = inlined_call_operand.vmem [shape: f32[1,32], index: 5, kind: input, shape index: {}]   ;;  %s4853_s6 = inlined_call_operand.hbm [shape: bf16[32,32], index: 6, kind: input, shape index: {}]   ;;  %s4854_s7 = inlined_call_operand.vmem [shape: f32[1,32], index: 7, kind: input, shape index: {}]   ;;  %s4855_s8 = inlined_call_operand.hbm [shape: bf16[32,32], index: 8, kind: input, shape index: {}]   ;;  %s4856_s9 = inlined_call_operand.vmem [shape: f32[1,32], index: 9, kind: input, shape index: {}]   ;;  %s4857_s10 = inlined_call_operand.hbm [shape: bf16[32,32], index: 10, kind: input, shape index: {}]   ;;  %s4858_s11 = inlined_call_operand.vmem [shape: f32[1,32], index: 11, kind: input, shape index: {}]   ;;  %s4859_s12 = inlined_call_operand.vmem [shape: f32[1,32], index: 12, kind: input, shape index: {}]   ;;  %s4860_s13 = inlined_call_operand.vmem [shape: f32[1,32], index: 13, kind: input, shape index: {}]   ;;  %s4861_s14 = inlined_call_operand.hbm [shape: bf16[32,64], index: 14, kind: input, shape index: {}]   ;;  %s4862_s15 = inlined_call_operand.vmem [shape: f32[1,64], index: 15, kind: input, shape index: {}]   ;;  %s4863_s16 = inlined_call_operand.vmem [shape: bf16[64,32], index: 16, kind: input, shape index: {}]   ;;  %s4864_s17 = inlined_call_operand.vmem [shape: f32[1,32], index: 17, kind: input, shape index: {}]   ;;  %s4865_s18 = inlined_call_operand.vmem [shape: f32[1,32], index: 18, kind: input, shape index: {}]   ;;  %s4866_s19 = inlined_call_operand.vmem [shape: f32[1,32], index: 19, kind: input, shape index: {}]   ;;  %s4867_s20 = inlined_call_operand.hbm [shape: f32[2,8,32], index: 20, kind: output, shape index: {0}]   ;;  %s4868_s21 = inlined_call_operand.hbm [shape: f32[2,4,8,24], index: 21, kind: output, shape index: {1}]  }
   0x1   :  { %4884 = sst [smem:[#allocation33_spill]] %s4847_s0 }
   0x2   :  { %4885 = sst [smem:[#allocation34_spill]] %s4848_s1 }
   0x3   :  { %4886 = sst [smem:[#allocation35_spill]] %s4849_s2 }
   0x4   :  { %4887 = sst [smem:[#allocation36_spill]] %s4850_s3 }
   0x5   :  { %4888 = sst [smem:[#allocation37_spill]] %s4851_s4 }
   0x6   :  { %4889 = sst [smem:[#allocation38_spill]] %s4852_s5 }
   0x7   :  { %4890 = sst [smem:[#allocation39_spill]] %s4853_s6 }
   0x8   :  { %4891 = sst [smem:[#allocation40_spill]] %s4855_s8 }
   0x9   :  { %4892 = sst [smem:[#allocation41_spill]] %s4857_s10 }
   0xa   :  { %4893 = sst [smem:[#allocation42_spill]] %s4861_s14 }
   0xb   :  { %4894 = sst [smem:[#allocation43_spill]] %s4864_s17 }
   0xc   :  { %4895 = sst [smem:[#allocation44_spill]] %s4865_s18 }
   0xd   :  { %4896 = sst [smem:[#allocation45_spill]] %s4866_s19 }
   0xe   :  { %4897 = sst [smem:[#allocation46_spill]] %s4867_s20 }
   0xf   :  { %4898 = sst [smem:[#allocation47_spill]] %s4868_s21 }
  0x10   :  { %27 = vsyncpa [#allocation3], 0 }
  0x11   :  { %29 = vsyncpa [#allocation3 + $0x1], 0 }
  0x12   :  { %30 = vsyncpa [#allocation6], 0 }
  0x13   :  { %32 = vsyncpa [#allocation6 + $0x1], 0 }
  0x14   :  { %33 = vsyncpa [#allocation9], 0 }
  0x15   :  { %34 = vsyncpa [#allocation12], 0 }
  0x16   :  { %35 = vsyncpa [#allocation15], 0 }
  0x17   :  { %36 = vsyncpa [#allocation4], 0 }
  0x18   :  { %38 = vsyncpa [#allocation4 + $0x1], 0 }
  0x19   :  { %39 = vsyncpa [#allocation18], 0 }
  0x1a   :  { %41 = vsyncpa [#allocation18 + $0x1], 0  ;;  %s4109_s2 = smov 0   ;;  %s4111_s25 = smov 0  }
  0x1b   :  { %s4113_s26 = smov 0   ;;  %s4115_s27 = smov 0  }
  0x1c LB: > { %4899 = sst [smem:[#allocation27_spill]] %s3960_s2  ;;  %s3974_s3 = smov [#allocation7]   ;;  %s3972_s27 = sphi %s4115_s27, %s4945_s27   ;;  %s3968_s26 = sphi %s4113_s26, %s4947_s26   ;;  %s3964_s25 = sphi %s4111_s25, %s4949_s25   ;;  %s3960_s2 = sphi %s4109_s2, %s4948_s2  }
  0x1d   : > { %4900 = sst [smem:[#allocation28_spill]] %s3968_s26  ;;  %s551_s28 = sshll.u32 %s3974_s3, 4  ;;  %s552_s28 = int_to_ptr.vmem [resolvable:$true] %s551_s28 }
  0x1e   : > { %s4130_s29 = sadd.s32 4294967295, %s3972_s27   ;;  %p3223_p0 = scmp.ge.s32.totalorder %s3972_s27, 1 }
  0x1f   : > { %p4880_p1 = scmp.eq.s32.totalorder %s4130_s29, 0  ;;  %p539_p2 = scmp.lt.s32.totalorder %s3972_s27, 3 }
  0x20   : > { %s3975_s4 = smov [#allocation8]   ;;  %s3976_s22 = smov [#allocation11]  }
  0x21   : > { %p4135_p3 = pnand %p3223_p0, %p539_p2  ;;  %s564_s30 = sshll.u32 %s3975_s4, 4  ;;  %s4148_s30 = int_to_ptr.vmem [resolvable:$true] %s564_s30 }
  0x22   : > { %s4150_s23 = sshll.u32 %s3976_s22, 4  ;;  %s3657_s24 = scalar_lea.vmem %s552_s28, 384  ;;  %s597_s23 = int_to_ptr.vmem [resolvable:$true] %s4150_s23 }
  0x23   : > { %s4901_s0 = scalar_select %p4135_p3, 1, 0 }
  0x24   : > { %p3507_p5 = pneg %p4135_p3  ;;  %p3658_p8 = scmp.ne.s32.totalorder %s552_s28, %s3657_s24 }
  0x25   : > { %p3665_p11 = scmp.lt.s32.totalorder %s552_s28, %s552_s28  ;;  %p3666_p12 = scmp.lt.s32.totalorder %s3657_s24, %s3657_s24 }
  0x26   : > { %p4144_p6 = pnand %p3507_p5, %p4880_p1 }
  0x27   : > { %p3667_p13 = por %p3666_p12, %p3665_p11 }
  0x28   : > { %p4154_p7 = pneg %p4144_p6 }
  0x2a   : > { %p3660_p9 = pnand %p3658_p8, %p4154_p7 }
  0x2c   : > { %p3661_p10 = pneg %p3660_p9 }
  0x2e   : > { %p3668_p0 = pnand %p3667_p13, %p3661_p10 }
  0x30   : > { %3671 = shalt.err (!%p3668_p0)
}
  0x31   : > { %s3977_s3 = smov 128   ;;  %s3978_s4 = smov 8  }
  0x32   : > { %s4904_s19 = sld [smem:[#allocation36_spill]]  ;;  %s3683_s18 = scalar_lea.vmem %s4148_s30, 256 }
  0x33   : > { %p3684_p2 = scmp.ne.s32.totalorder %s4148_s30, %s3683_s18  ;;  %p3691_p9 = scmp.lt.s32.totalorder %s4148_s30, %s4148_s30 }
  0x34   : > { %p3692_p10 = scmp.lt.s32.totalorder %s3683_s18, %s3683_s18 }
  0x35   : > { %p3686_p5 = pnand %p3684_p2, %p4154_p7 }
  0x36   : > { %p3693_p11 = por %p3692_p10, %p3691_p9 }
  0x37   : > { %p3687_p8 = pneg %p3686_p5 }
  0x38   : > { %3510 = dma.hbm_to_vmem [thread:$0]  (!%p4144_p6), %s4904_s19, 384, %s552_s28, [#allocation6], %s3977_s3, %s3977_s3, %s3978_s4  }
  0x39   : > { %p3694_p12 = pnand %p3693_p11, %p3687_p8 }
  0x3b   : > { %3697 = shalt.err (!%p3694_p12)
}
  0x3c   : > { %s3979_s24 = smov 64   ;;  %s3980_s21 = smov 4  }
  0x3d   : > { %s4905_s28 = sld [smem:[#allocation37_spill]]  ;;  %s3709_s3 = scalar_lea.vmem %s597_s23, 256 }
  0x3e   : > { %p3710_p13 = scmp.ne.s32.totalorder %s597_s23, %s3709_s3  ;;  %p3717_p5 = scmp.lt.s32.totalorder %s597_s23, %s597_s23 }
  0x3f   : > { %p3718_p8 = scmp.lt.s32.totalorder %s3709_s3, %s3709_s3 }
  0x40   : > { %p3712_p0 = pnand %p3710_p13, %p4154_p7 }
  0x41   : > { %p3719_p9 = por %p3718_p8, %p3717_p5 }
  0x42   : > { %p3713_p2 = pneg %p3712_p0 }
  0x43   : > { %3513 = dma.hbm_to_vmem [thread:$0]  (!%p4144_p6), %s4905_s28, 256, %s4148_s30, [#allocation9], %s3979_s24, %s3979_s24, %s3980_s21  }
  0x44   : > { %p3720_p10 = pnand %p3719_p9, %p3713_p2 }
  0x46   : > { %3723 = shalt.err (!%p3720_p10)
}
  0x47   : > { %s4906_s8 = sld [smem:[#allocation40_spill]]  ;;  %s3981_s30 = smov [#allocation10]  }
  0x48   : > { %s580_s22 = sshll.u32 %s3981_s30, 4  ;;  %s3982_s19 = smov [#allocation13]   ;;  %s581_s22 = int_to_ptr.vmem [resolvable:$true] %s580_s22 }
  0x49   : > { %s612_s20 = sshll.u32 %s3982_s19, 4  ;;  %s3735_s28 = scalar_lea.vmem %s581_s22, 256  ;;  %s613_s20 = int_to_ptr.vmem [resolvable:$true] %s612_s20 }
  0x4a   : > { %p3736_p11 = scmp.ne.s32.totalorder %s581_s22, %s3735_s28  ;;  %p3743_p0 = scmp.lt.s32.totalorder %s581_s22, %s581_s22 }
  0x4b   : > { %p3744_p2 = scmp.lt.s32.totalorder %s3735_s28, %s3735_s28 }
  0x4c   : > { %p3738_p12 = pnand %p3736_p11, %p4154_p7 }
  0x4d   : > { %3519 = dma.hbm_to_vmem [thread:$0]  (!%p4144_p6), %s4906_s8, 256, %s597_s23, [#allocation12], %s3979_s24, %s3979_s24, %s3980_s21  }
  0x4e   : > { %p3739_p13 = pneg %p3738_p12  ;;  %p3745_p5 = por %p3744_p2, %p3743_p0 }
  0x50   : > { %p3746_p8 = pnand %p3745_p5, %p3739_p13 }
  0x52   : > { %3749 = shalt.err (!%p3746_p8)
}
  0x53   : > { %s4907_s6 = sld [smem:[#allocation39_spill]]  ;;  %s3761_s18 = scalar_lea.vmem %s613_s20, 256 }
  0x54   : > { %p3762_p9 = scmp.ne.s32.totalorder %s613_s20, %s3761_s18  ;;  %p3769_p12 = scmp.lt.s32.totalorder %s613_s20, %s613_s20 }
  0x55   : > { %p3770_p0 = scmp.lt.s32.totalorder %s3761_s18, %s3761_s18 }
  0x56   : > { %p3764_p10 = pnand %p3762_p9, %p4154_p7 }
  0x57   : > { %p3771_p13 = por %p3770_p0, %p3769_p12 }
  0x58   : > { %p3765_p11 = pneg %p3764_p10 }
  0x59   : > { %3516 = dma.hbm_to_vmem [thread:$0]  (!%p4144_p6), %s4907_s6, 256, %s581_s22, [#allocation9], %s3979_s24, %s3979_s24, %s3980_s21  }
  0x5a   : > { %p3772_p2 = pnand %p3771_p13, %p3765_p11 }
  0x5c   : > { %3775 = shalt.err (!%p3772_p2)
}
  0x5d   : > { %s4908_s10 = sld [smem:[#allocation41_spill]]  ;;  %s3983_s22 = smov [#allocation14]  }
  0x5e   : > { %s634_s19 = sshll.u32 %s3983_s22, 4  ;;  %s635_s19 = int_to_ptr.vmem [resolvable:$true] %s634_s19 }
  0x5f   : > { %s3787_s28 = scalar_lea.vmem %s635_s19, 256  ;;  %p3795_p10 = scmp.lt.s32.totalorder %s635_s19, %s635_s19 }
  0x60   : > { %p3788_p5 = scmp.ne.s32.totalorder %s635_s19, %s3787_s28  ;;  %p3796_p11 = scmp.lt.s32.totalorder %s3787_s28, %s3787_s28 }
  0x62   : > { %p3790_p8 = pnand %p3788_p5, %p4154_p7  ;;  %p3797_p12 = por %p3796_p11, %p3795_p10 }
  0x63   : > { %3522 = dma.hbm_to_vmem [thread:$0]  (!%p4144_p6), %s4908_s10, 256, %s613_s20, [#allocation12], %s3979_s24, %s3979_s24, %s3980_s21  }
  0x64   : > { %p3791_p9 = pneg %p3790_p8 }
  0x66   : > { %p3798_p0 = pnand %p3797_p12, %p3791_p9 }
  0x68   : > { %3801 = shalt.err (!%p3798_p0)
}
  0x69   : > { %s4909_s14 = sld [smem:[#allocation42_spill]]  ;;  %s3222_s5 = sadd.s32 4294967294, %s3972_s27  }
  0x6a   : > { %s4223_s1 = sadd.s32 1, %s3972_s27   ;;  %s54_s18 = sadd.s32 1, %s3968_s26 }
  0x6b   : > { %4910 = sst [smem:[#allocation29_spill]] %s4223_s1  ;;  %s51_s3 = ssub.s32 %s3972_s27, %s4223_s1 }
  0x6c   : > { %p52_p7 = scmp.eq.s32.totalorder %s51_s3, 0  ;;  %p61_p13 = scmp.ne.s32.totalorder %s3968_s26, %s3964_s25 }
  0x6d   : > { %p62_p2 = scmp.eq.s32.totalorder %s3972_s27, 0  ;;  %p67_p5 = scmp.ne.s32.totalorder %s3964_s25, %s3960_s2 }
  0x6e   : > { %s4234_s4 = scalar_select %p52_p7, %s3968_s26, %s54_s18  }
  0x6f   : > { %3525 = dma.hbm_to_vmem [thread:$0]  (!%p4144_p6), %s4909_s14, 256, %s635_s19, [#allocation15], %s3979_s24, %s3979_s24, %s3980_s21  }
  0x70   : > { %4911 = sst [smem:[#allocation30_spill]] %s4234_s4  ;;  %p4236_p8 = por %p62_p2, %p61_p13 }
  0x71   : > { %p4242_p6 = por %p4880_p1, %p67_p5  ;;  %p500_p9 = scmp.eq.s32.totalorder %s4130_s29, 1 }
  0x72   : > { %p506_p10 = scmp.eq.s32.totalorder %s3222_s5, 1  ;;  %p3546_p11 = scmp.lt.s32.totalorder %s3972_s27, 2 }
  0x73   : > { %s4913_s21 = scalar_select %p4242_p6, 1, 0 }
  0x74   : > { %s663_s24 = sand.u32 1, %s3968_s26   ;;  %p4249_p12 = por %p500_p9, %p61_p13 }
  0x75   : > { %p4253_p0 = por %p506_p10, %p67_p5  ;;  %s4257_s28 = sshll.u32 %s663_s24, 3 }
  0x76   : > { %s4914_s22 = scalar_select %p4249_p12, 1, 0 }
  0x77   : > { %s4916_s19 = scalar_select %p4253_p0, 1, 0 }
  0x78   : > { %4915 = sst [smem:[#allocation31_spill]] %s4914_s22  ;;  %s3232_s23 = sshll.u32 %s3972_s27, 7 }
  0x79   : > { %4917 = sst [smem:[#allocation32_spill]] %s4916_s19  ;;  %s667_s5 = scalar_lea.vmem [#allocation2], %s4257_s28 }
  0x7a   : > { %s4918_s18 = sld [smem:[#allocation33_spill]]  ;;  %s674_s8 = sshll.u32 %s667_s5, 4  ;;  %s4266_s8 = int_to_ptr.vmem [resolvable:$true] %s674_s8 }
  0x7b   : > { %p4270_p7 = pnand %p3546_p11, %p4236_p8  ;;  %s4920_s26 = sld [smem:[#allocation35_spill]] }
  0x7c   : > { %s689_s3 = sand.u32 1, %s3972_s27   ;;  %s664_s19 = scalar_lea.sflag [#allocation3], %s663_s24 }
  0x7d   : > { %p3804_p2 = pneg %p4270_p7 }
  0x80   : > { %s4263_s6 = scalar_lea.hbm %s4918_s18, %s3232_s23  ;;  %s3807_s22 = scalar_lea.hbm %s4918_s18, 256 }
  0x81   : > { %s4921_s1 = smov %s4920_s26  ;;  %s4277_s20 = scalar_lea.hbm %s4920_s26, %s3232_s23 }
  0x82   : > { %s3802_s2 = scalar_lea.hbm %s4263_s6, 128  ;;  %p3808_p9 = scmp.lt.s32.totalorder %s4263_s6, %s4918_s18 }
  0x83   : > { %p3803_p13 = scmp.ne.s32.totalorder %s4263_s6, %s3802_s2  ;;  %p3809_p10 = scmp.lt.s32.totalorder %s3807_s22, %s3802_s2 }
  0x85   : > { %p3805_p5 = pnand %p3804_p2, %p3803_p13  ;;  %p3810_p11 = por %p3809_p10, %p3808_p9 }
  0x87   : > { %p3806_p8 = pneg %p3805_p5 }
  0x89   : > { %p3811_p4 = pnand %p3810_p11, %p3806_p8 }
  0x8b   : > { %3814 = shalt.err (!%p3811_p4)
}
  0x8c   : > { %s3815_s26 = scalar_lea.vmem %s4266_s8, 128  ;;  %s3984_s4 = smov [#allocation2]  }
  0x8d   : > { %p3816_p1 = scmp.ne.s32.totalorder %s4266_s8, %s3815_s26  ;;  %s3820_s24 = sshll.u32 %s3984_s4, 4  ;;  %s3821_s24 = int_to_ptr.vmem [resolvable:$false] %s3820_s24 }
  0x8e   : > { %s3822_s23 = scalar_lea.vmem %s3821_s24, 256  ;;  %p3823_p0 = scmp.lt.s32.totalorder %s4266_s8, %s3821_s24 }
  0x8f   : > { %p3818_p13 = pnand %p3816_p1, %p3804_p2  ;;  %p3824_p12 = scmp.lt.s32.totalorder %s3822_s23, %s3815_s26 }
  0x91   : > { %p3819_p5 = pneg %p3818_p13  ;;  %p3825_p6 = por %p3824_p12, %p3823_p0 }
  0x93   : > { %p3826_p9 = pnand %p3825_p6, %p3819_p5 }
  0x95   : > { %3829 = shalt.err (!%p3826_p9)
}
  0x96   : > { %3529 = dma.hbm_to_vmem [thread:$0]  (!%p4270_p7), %s4263_s6, 128, %s4266_s8, %s664_s19  }
  0x97   : > { %s693_s17 = scalar_lea.vmem [#allocation5], %s4257_s28  ;;  %s690_s22 = scalar_lea.sflag [#allocation6], %s689_s3 }
  0x98   : > { %s700_s2 = sshll.u32 %s693_s17, 4  ;;  %s3830_s30 = scalar_lea.hbm %s4277_s20, 128  ;;  %s701_s2 = int_to_ptr.vmem [resolvable:$true] %s700_s2 }
  0x99   : > { %p3831_p1 = scmp.ne.s32.totalorder %s4277_s20, %s3830_s30  ;;  %s3835_s26 = scalar_lea.hbm %s4921_s1, 256 }
  0x9a   : > { %p3836_p12 = scmp.lt.s32.totalorder %s4277_s20, %s4921_s1  ;;  %p3837_p0 = scmp.lt.s32.totalorder %s3835_s26, %s3830_s30 }
  0x9b   : > { %p3833_p4 = pnand %p3831_p1, %p3804_p2 }
  0x9c   : > { %p3838_p8 = por %p3837_p0, %p3836_p12 }
  0x9d   : > { %p3834_p6 = pneg %p3833_p4 }
  0x9f   : > { %p3839_p10 = pnand %p3838_p8, %p3834_p6 }
  0xa1   : > { %3842 = shalt.err (!%p3839_p10)
}
  0xa2   : > { %s3843_s6 = scalar_lea.vmem %s701_s2, 128  ;;  %s3985_s8 = smov [#allocation5]  }
  0xa3   : > { %p3844_p11 = scmp.ne.s32.totalorder %s701_s2, %s3843_s6  ;;  %s3848_s19 = sshll.u32 %s3985_s8, 4  ;;  %s3849_s19 = int_to_ptr.vmem [resolvable:$false] %s3848_s19 }
  0xa4   : > { %s3850_s28 = scalar_lea.vmem %s3849_s19, 256  ;;  %p3851_p9 = scmp.lt.s32.totalorder %s701_s2, %s3849_s19 }
  0xa5   : > { %p3846_p13 = pnand %p3844_p11, %p3804_p2  ;;  %p3852_p1 = scmp.lt.s32.totalorder %s3850_s28, %s3843_s6 }
  0xa7   : > { %p3847_p5 = pneg %p3846_p13  ;;  %p3853_p4 = por %p3852_p1, %p3851_p9 }
  0xa9   : > { %p3854_p3 = pnand %p3853_p4, %p3847_p5 }
  0xab   : > { %3857 = shalt.err (!%p3854_p3)
}
  0xac   : > { %3532 = dma.hbm_to_vmem [thread:$0]  (!%p4270_p7), %s4277_s20, 128, %s701_s2, %s690_s22  }
  0xad   : > { %p4922_p6 = scmp.ne.s32.totalorder %s4901_s0, 0 }
  0xae   : > { %s4328_s3 = sand.u32 (!%p4922_p6), 1, %s3964_s25   ;;  %p4923_p2 = scmp.ne.s32.totalorder (!%p4922_p6), %s4913_s21, 0 }
  0xaf   : > { %709 = sbr.rel (%p4922_p6) target bundleno = 2706 (0xa92), region = 100  ;;  %s4331_s23 = sshll.u32 (!%p4922_p6), %s4328_s3, 3 }
  0xb0   : > { %s712_s17 = scalar_lea.sflag (!%p4922_p6), [#allocation3], %s4328_s3  ;;  %s715_s30 = scalar_lea.vmem (!%p4922_p6), [#allocation2], %s4331_s23 }
  0xb4   : > { %3927 = dma.done.wait (%p4923_p2), %s712_s17, 128  }
  0xb5   : > { %3929 = vsyncadd (%p4923_p2), %s712_s17, 4294967168  ;;  %s720_s10 = sand.u32 1, %s4130_s29   ;;  %s724_s20 = scalar_lea.vmem [#allocation5], %s4331_s23 }
  0xb6   : > { %s721_s0 = scalar_lea.sflag [#allocation6], %s720_s10 }
  0xb7   : > { %3931 = dma.done.wait (%p4923_p2), %s721_s0, 128  }
  0xb8   : > { %3933 = vsyncadd (%p4923_p2), %s721_s0, 4294967168  ;;  %p4924_p3 = scmp.eq.s32.totalorder %s4130_s29, 0 }
  0xba   : > { %3935 = dma.done.wait (%p4924_p3), [#allocation6], 384   ;;  %p4925_p7 = pmov %p4924_p3 }
  0xbb   : > { %p4926_p12 = pmov %p4924_p3 }
  0xbc   : > { %3937 = vsyncadd (%p4925_p7), [#allocation6], 4294966912 }
  0xbd   : > { %3939 = dma.done.wait (%p4926_p12), [#allocation9], 512   ;;  %p4927_p0 = pmov %p4924_p3 }
  0xbf   : > { %3941 = vsyncadd (%p4927_p0), [#allocation9], 4294966784  ;;  %p4928_p8 = pmov %p4927_p0 }
  0xc0   : > { %p4929_p10 = pmov %p4927_p0 }
  0xc1   : > { %3943 = dma.done.wait (%p4928_p8), [#allocation12], 512  }
  0xc2   : > { %3945 = vsyncadd (%p4929_p10), [#allocation12], 4294966784  ;;  %p4930_p11 = pmov %p4927_p0 }
  0xc3   : > { %p4931_p13 = pmov %p4927_p0 }
  0xc4   : > { %3947 = dma.done.wait (%p4930_p11), [#allocation15], 256  }
  0xc5   : > { %3949 = vsyncadd (%p4931_p13), [#allocation15], 4294967040  ;;  %p822_p5 = scmp.lt.s32.totalorder %s4130_s29, 1  ;;  %v3986_v0 = vmov 0.0   ;;  %vm3987_vm0 = vmmov 0   ;;  %s4932_s14 = sld [smem:[#allocation34_spill]]  ;;  %v1072_v36 = vlaneseq }
  0xc6   : > { %3358 = vmatprep.subr.bf16.mxu0 %v3986_v0  ;;  %3362 = vmatprep.mubr.msk.bf16.mxu0 %vm3987_vm0, %v3986_v0  ;;  %v3607_v1 = vld [vmem:[#allocation10 + $0x8] sm:$0xff]   ;;  %v3608_v2 = vld [vmem:[#allocation10] sm:$0xff]   ;;  %vm859_vm1 = vcmask 261120   ;;  %v3609_v7 = vld [vmem:[#allocation8 + $0x8] sm:$0xff]   ;;  %s3988_s6 = smov 104   ;;  %s3989_s8 = smov 120  }
  0xc7   : > { %s823_s21 = scalar_select %p822_p5, %s4130_s29, 1  ;;  %3366 = vmatprep.subr.bf16.mxu1 %v3607_v1  ;;  %v3610_v8 = vld [vmem:[#allocation8] sm:$0xff]   ;;  %3359 = vmatpush3.bf16.msra.mxu0 %v3609_v7  ;;  %v828_v9 = vld [vmem:[%s715_s30] sm:$0xff]  ;;  %v982_v14 = vld [vmem:[#allocation7 + $0x10] sm:$0xff]  ;;  %v3991_v34 = vmov 1983009808  }
  0xc8   : > { %3367 = vmatpush3.bf16.msra.mxu1 %v3607_v1  ;;  %3360 = vmatprep.subr.bf16.mxu0 %v3986_v0  ;;  %v833_v11 = vpack.c.bf16 %v828_v9, %v828_v9  ;;  %v3251_v12 = vld [vmem:[%s4854_s7] ss:$0 sm:$0xff]  ;;  %v981_v28 = vld [vmem:[#allocation7 + $0x8] sm:$0xff]  ;;  %s3990_s19 = smov 112   ;;  %s4933_s10 = sld [smem:[#allocation38_spill]]  ;;  %v3612_v32 = vld [vmem:[#allocation11] sm:$0xff]   ;;  %v1070_v35 = vunpack.c.l.s4 %v3991_v34 }
  0xc9   : > { %s3474_s2 = smul.u32 24, %s823_s21  ;;  %3368 = vmatprep.subr.bf16.mxu1 %v3608_v2  ;;  %v980_v20 = vld [vmem:[#allocation7] sm:$0xff]  ;;  %v3992_v37 = vmov 1934713408   ;;  %v1073_v40 = vshrl.u32 %v1072_v36, 7  ;;  %vm2099_vm2 = vcmask 64512  }
  0xca   : > { %v3611_v27 = vld [vmem:[#allocation11 + $0x8] sm:$0xff]   ;;  %v1102_v38 = vunpack.c.l.s4 %v3992_v37  ;;  %v1071_v39 = vunpack.c.0.s8 %v1070_v35  ;;  %vm2304_vm3 = vcmask 195584   ;;  %vm2372_vm4 = vcmask 1043456   ;;  %s3245_s21 = sshll.u32 %s4328_s3, 5  ;;  %s3993_s22 = smov 16  }
  0xcb   : > { %s826_s26 = scalar_lea.vmem %s4932_s14, %s3474_s2  ;;  %3361 = vmatpush3.bf16.msra.mxu0 %v3610_v8  ;;  %s4639_s2 = scalar_lea.vmem [#allocation17], %s3245_s21  ;;  %vm2703_vm5 = vcmask 130048   ;;  %vm2918_vm6 = vcmask 523264  }
  0xcc   : > { %v829_v3 = vld [vmem:[%s826_s26] sm:$0xff]  ;;  %v830_v4 = vld [vmem:[%s826_s26 + $0x8] sm:$0xff]  ;;  %v831_v5 = vld [vmem:[%s826_s26 + $0x10] sm:$0xff]  ;;  %3369 = vmatpush3.bf16.msra.mxu1 %v3608_v2  ;;  %3374 = vmatprep.subr.bf16.mxu0 %v3611_v27  ;;  %v1103_v43 = vunpack.c.0.s8 %v1102_v38  ;;  %v4416_v44 = vsub.s32 %v1071_v39, %v1073_v40  ;;  %s3994_s5 = smov 8   ;;  %s3995_s14 = smov 24  }
  0xcd   : > { %v834_v6 = vpack.c.bf16 %v830_v4, %v829_v3  ;;  %v835_v10 = vpack.c.bf16 %v831_v5, %v831_v5  ;;  %3382 = vmatprep.subr.bf16.mxu1 %v3986_v0  ;;  %s4934_s24 = sld [smem:[#allocation43_spill]] }
  0xce   : > { %3363 = vmatmul.mubr.msk.bf16.vlgmr.msra.gmra.mxu0 %vm859_vm1, %v833_v11  ;;  %v3247_v31 = vld [vmem:[%s4933_s10] ss:$0 sm:$0xff]  ;;  %v4418_v51 = vsub.s32 %v1103_v43, %v1073_v40  ;;  %s4936_s10 = sld [smem:[#allocation47_spill]] }
  0xcf   : > { %3370 = vmatprep.mubr.msk.bf16.mxu1 %vm859_vm1, %v834_v6  ;;  %3378 = vmatprep.mubr.msk.bf16.mxu0 %vm859_vm1, %v834_v6 }
  0xd0   : > { %3371 = vmatmul.mubr.msk.bf16.vlgmr.msra.gmra.mxu1 %vm859_vm1, %v835_v10  ;;  %3375 = vmatpush3.bf16.msra.mxu0 %v3611_v27 }
  0xd1   : > { %3386 = vmatprep.mubr.msk.bf16.mxu1 %vm3987_vm0, %v3986_v0  ;;  %3376 = vmatprep.subr.bf16.mxu0 %v3612_v32 }
  0xd4   : > { %3377 = vmatpush3.bf16.msra.mxu0 %v3612_v32 }
  0xd5   : > { %3390 = vmatprep.subr.bf16.mxu0 %v3986_v0 }
  0xd7   : > { %3379 = vmatmul.mubr.msk.bf16.vlgmr.msra.gmra.mxu0 %vm859_vm1, %v835_v10 }
  0xd8   : > { %3394 = vmatprep.mubr.msk.bf16.mxu0 %vm3987_vm0, %v3986_v0 }
 0x18e   : > { %v897_v17 = vpop.f32.mrf.mxu0 }
 0x18f   : > { %v4402_v33 = vadd.f32 %v3247_v31, %v897_v17 }
 0x190   : > { %v3372_v13 = vpop.f32.mrf.mxu1  ;;  %v3364_v22 = vpop.f32.mrf.mxu0 }
 0x191   : > { %v975_v15 = vadd.f32 %v3372_v13, %v3251_v12 }
 0x192   : > { %v966_v16 = vpop.f32.mrf.mxu1  ;;  %v900_v24 = vpop.f32.mrf.mxu0 }
 0x193   : > { %v985_v18 = vadd.f32 %v982_v14, %v975_v15  ;;  %v967_v19 = vadd.f32 %v3251_v12, %v966_v16 }
 0x194   : > { %v3373_v21 = vpop.f32.mrf.mxu1  ;;  %v3365_v29 = vpop.f32.mrf.mxu0 }
 0x195   : > { %1232 = vrot.lane.b32.xlu1 %v985_v18, %s3988_s6  ;;  %1214 = vrot.lane.b32.xlu0 %v985_v18, %s3989_s8  ;;  %v4384_v25 = vadd.f32 %v980_v20, %v967_v19 }
 0x196   : > { %v969_v23 = vpop.f32.mrf.mxu1 }
 0x197   : > { %v970_v26 = vadd.f32 %v3251_v12, %v969_v23 }
 0x199   : > { %1223 = vrot.lane.b32.xlu0 %v985_v18, %s3990_s19  ;;  %1210 = vrot.lane.b32.xlu1 %v4384_v25, %s3989_s8  ;;  %v4389_v30 = vadd.f32 %v981_v28, %v970_v26 }
 0x19d   : > { %1212 = vrot.lane.b32.xlu0 %v4389_v30, %s3989_s8  ;;  %1219 = vrot.lane.b32.xlu1 %v4384_v25, %s3990_s19 }
 0x1a1   : > { %1221 = vrot.lane.b32.xlu0 %v4389_v30, %s3990_s19  ;;  %1228 = vrot.lane.b32.xlu1 %v4384_v25, %s3988_s6 }
 0x1a5   : > { %1230 = vrot.lane.b32.xlu0 %v4389_v30, %s3988_s6  ;;  %1058 = vrot.lane.b32.xlu1 %v4402_v33, %s3989_s8 }
 0x1a9   : > { %1061 = vrot.lane.b32.xlu0 %v4402_v33, %s3990_s19  ;;  %1064 = vrot.lane.b32.xlu1 %v4402_v33, %s3988_s6 }
 0x207   : > { %v1233_v41 = vpop.permute.xlu1 %1232  ;;  %v1215_v42 = vpop.permute.xlu0 %1214 }
 0x208   : > { %v1389_v45 = vcombine.low %v1215_v42, %v1233_v41  ;;  %v1390_v46 = vcombine.high %v1215_v42, %v1233_v41 }
 0x20a   : > { %v1397_v52 = vrot.slane %v1389_v45, %v4416_v44  ;;  %v1404_v53 = vrot.slane %v1390_v46, %v4416_v44 }
 0x20b   : > { %v1224_v47 = vpop.permute.xlu0 %1223  ;;  %v1211_v48 = vpop.permute.xlu1 %1210 }
 0x20c   : > { %v1373_v49 = vcombine.low %v985_v18, %v1224_v47  ;;  %v1374_v50 = vcombine.high %v985_v18, %v1224_v47 }
 0x20e   : > { %v1381_v54 = vrot.slane %v1373_v49, %v4416_v44  ;;  %v1388_v55 = vrot.slane %v1374_v50, %v4416_v44 }
 0x20f   : > { %v1213_v56 = vpop.permute.xlu0 %1212  ;;  %v1220_v57 = vpop.permute.xlu1 %1219 }
 0x210   : > { %v1405_v58 = vcombine.low %v1381_v54, %v1397_v52  ;;  %v1406_v59 = vcombine.high %v1381_v54, %v1397_v52  ;;  %v1421_v60 = vcombine.low %v1388_v55, %v1404_v53  ;;  %v1422_v61 = vcombine.high %v1388_v55, %v1404_v53 }
 0x211   : > { %v1237_v62 = vcombine.low %v4384_v25, %v1220_v57  ;;  %v1238_v4 = vcombine.high %v4384_v25, %v1220_v57 }
 0x212   : > { %v1413_v63 = vrot.slane %v1405_v58, %v4418_v51  ;;  %v1420_v1 = vrot.slane %v1406_v59, %v4418_v51  ;;  %v1429_v2 = vrot.slane %v1421_v60, %v4418_v51  ;;  %v1436_v3 = vrot.slane %v1422_v61, %v4418_v51 }
 0x213   : > { %v1245_v5 = vrot.slane %v1237_v62, %v4416_v44  ;;  %v1222_v6 = vpop.permute.xlu0 %1221  ;;  %v1229_v7 = vpop.permute.xlu1 %1228  ;;  %v1252_v20 = vrot.slane %v1238_v4, %v4416_v44 }
 0x214   : > { %v1577_v8 = vcombine.low %v1413_v63, %v1420_v1  ;;  %v3267_v9 = vcombine.high %v1413_v63, %v1420_v1  ;;  %v1593_v10 = vcombine.low %v1429_v2, %v1436_v3  ;;  %v3268_v11 = vcombine.high %v1429_v2, %v1436_v3 }
 0x215   : > { %v1305_v12 = vcombine.low %v4389_v30, %v1222_v6  ;;  %v1306_v13 = vcombine.high %v4389_v30, %v1222_v6  ;;  %v1253_v14 = vcombine.low %v1211_v48, %v1229_v7  ;;  %v1254_v15 = vcombine.high %v1211_v48, %v1229_v7 }
 0x216   : > { %v4434_v16 = vrot.slane %v1577_v8, %v4416_v44  ;;  %v4437_v17 = vrot.slane %v3267_v9, %v4416_v44  ;;  %v4440_v18 = vrot.slane %v1593_v10, %v4416_v44  ;;  %v4443_v19 = vrot.slane %v3268_v11, %v4416_v44 }
 0x217   : > { %v1313_v21 = vrot.slane %v1305_v12, %v4416_v44  ;;  %v1261_v22 = vrot.slane %v1253_v14, %v4416_v44  ;;  %v1268_v23 = vrot.slane %v1254_v15, %v4416_v44  ;;  %v1231_v24 = vpop.permute.xlu0 %1230  ;;  %v1320_v25 = vrot.slane %v1306_v13, %v4416_v44  ;;  %v1059_v28 = vpop.permute.xlu1 %1058 }
 0x218   : > { %v1321_v26 = vcombine.low %v1213_v56, %v1231_v24  ;;  %v1322_v27 = vcombine.high %v1213_v56, %v1231_v24  ;;  %v1609_v29 = vcombine.low %v4434_v16, %v4437_v17  ;;  %v1625_v38 = vcombine.low %v4440_v18, %v4443_v19 }
 0x219   : > { %v1269_v30 = vcombine.low %v1245_v5, %v1261_v22  ;;  %v1270_v31 = vcombine.high %v1245_v5, %v1261_v22  ;;  %v1285_v32 = vcombine.low %v1252_v20, %v1268_v23  ;;  %v1286_v34 = vcombine.high %v1252_v20, %v1268_v23 }
 0x21a   : > { %v1329_v35 = vrot.slane %v1321_v26, %v4416_v44  ;;  %v1336_v36 = vrot.slane %v1322_v27, %v4416_v44  ;;  %v1617_v37 = vrot.slane %v1609_v29, %v4418_v51  ;;  %v1633_v62 = vrot.slane %v1625_v38, %v4418_v51 }
 0x21b   : > { %v1277_v39 = vrot.slane %v1269_v30, %v4418_v51  ;;  %v1284_v40 = vrot.slane %v1270_v31, %v4418_v51  ;;  %v1293_v41 = vrot.slane %v1285_v32, %v4418_v51  ;;  %v1300_v42 = vrot.slane %v1286_v34, %v4418_v51  ;;  %v1062_v57 = vpop.permute.xlu0 %1061  ;;  %v1065_v58 = vpop.permute.xlu1 %1064 }
 0x21c   : > { %v1337_v43 = vcombine.low %v1313_v21, %v1329_v35  ;;  %v1338_v45 = vcombine.high %v1313_v21, %v1329_v35  ;;  %v1353_v46 = vcombine.low %v1320_v25, %v1336_v36  ;;  %v1354_v47 = vcombine.high %v1320_v25, %v1336_v36 }
 0x21d   : > { %v1441_v48 = vcombine.low %v1277_v39, %v1284_v40  ;;  %v3263_v49 = vcombine.high %v1277_v39, %v1284_v40  ;;  %v1457_v50 = vcombine.low %v1293_v41, %v1300_v42  ;;  %v3264_v52 = vcombine.high %v1293_v41, %v1300_v42 }
 0x21e   : > { %v1345_v53 = vrot.slane %v1337_v43, %v4418_v51  ;;  %v1352_v54 = vrot.slane %v1338_v45, %v4418_v51  ;;  %v1361_v55 = vrot.slane %v1353_v46, %v4418_v51  ;;  %v1368_v56 = vrot.slane %v1354_v47, %v4418_v51 }
 0x21f   : > { %v4466_v59 = vrot.slane %v1441_v48, %v4416_v44  ;;  %v4469_v60 = vrot.slane %v3263_v49, %v4416_v44  ;;  %v4472_v61 = vrot.slane %v1457_v50, %v4416_v44  ;;  %v4476_v63 = vrot.slane %v3264_v52, %v4416_v44 }
 0x220   : > { %v1509_v1 = vcombine.low %v1345_v53, %v1352_v54  ;;  %v3265_v2 = vcombine.high %v1345_v53, %v1352_v54  ;;  %v1525_v3 = vcombine.low %v1361_v55, %v1368_v56  ;;  %v1067_v4 = vcombine.low %v4402_v33, %v1062_v57 }
 0x221   : > { %v1068_v5 = vcombine.high %v4402_v33, %v1062_v57  ;;  %v1083_v6 = vcombine.low %v1059_v28, %v1065_v58  ;;  %v1084_v7 = vcombine.high %v1059_v28, %v1065_v58  ;;  %v3266_v11 = vcombine.high %v1361_v55, %v1368_v56 }
 0x222   : > { %v4481_v8 = vrot.slane %v1509_v1, %v4416_v44  ;;  %v4484_v9 = vrot.slane %v3265_v2, %v4416_v44  ;;  %v4487_v10 = vrot.slane %v1525_v3, %v4416_v44  ;;  %v1075_v12 = vrot.slane %v1067_v4, %v4416_v44 }
 0x223   : > { %v1082_v13 = vrot.slane %v1068_v5, %v4416_v44  ;;  %v1091_v14 = vrot.slane %v1083_v6, %v4416_v44  ;;  %v1098_v33 = vrot.slane %v1084_v7, %v4416_v44  ;;  %v1641_v15 = vcombine.low %v1617_v37, %v1633_v62 }
 0x224   : > { %v1642_v20 = vcombine.high %v1617_v37, %v1633_v62  ;;  %v1473_v21 = vcombine.low %v4466_v59, %v4469_v60  ;;  %v1489_v22 = vcombine.low %v4472_v61, %v4476_v63  ;;  %v1540_v27 = vrot.slane %v3266_v11, %v4416_v44 }
 0x225   : > { %v1099_v23 = vcombine.low %v1075_v12, %v1091_v14  ;;  %v1100_v24 = vcombine.high %v1075_v12, %v1091_v14  ;;  %v1115_v25 = vcombine.low %v1082_v13, %v1098_v33  ;;  %v1116_v26 = vcombine.high %v1082_v13, %v1098_v33 }
 0x226   : > { %v1646_v28 = vpack.c.bf16 %v1641_v15, %v1641_v15  ;;  %v1648_v29 = vpack.c.bf16 %v1642_v20, %v1642_v20  ;;  %v1481_v30 = vrot.slane %v1473_v21, %v4418_v51  ;;  %v1497_v38 = vrot.slane %v1489_v22, %v4418_v51 }
 0x227   : > { %v1107_v31 = vrot.slane %v1099_v23, %v4418_v51  ;;  %v1114_v32 = vrot.slane %v1100_v24, %v4418_v51  ;;  %v1123_v34 = vrot.slane %v1115_v25, %v4418_v51  ;;  %v1130_v35 = vrot.slane %v1116_v26, %v4418_v51 }
 0x228   : > { %v2107_v36 = vsel %vm2099_vm2, %v1646_v28, 0  ;;  %v2156_v37 = vsel %vm2099_vm2, %v1648_v29, 0  ;;  %v1541_v39 = vcombine.low %v4481_v8, %v4484_v9  ;;  %v1557_v46 = vcombine.low %v4487_v10, %v1540_v27 }
 0x229   : > { %v1135_v40 = vcombine.low %v1107_v31, %v1114_v32  ;;  %v3261_v41 = vcombine.high %v1107_v31, %v1114_v32  ;;  %v1151_v42 = vcombine.low %v1123_v34, %v1130_v35  ;;  %v3262_v43 = vcombine.high %v1123_v34, %v1130_v35  ;;  %3383 = vmatpush3.bf16.xpose.msra.mxu1 %v2107_v36 }
 0x22a   : > { %3391 = vmatpush3.bf16.xpose.msra.mxu0 %v2156_v37  ;;  %3384 = vmatprep.subr.bf16.mxu1 %v3986_v0  ;;  %v1549_v45 = vrot.slane %v1541_v39, %v4418_v51  ;;  %v1565_v52 = vrot.slane %v1557_v46, %v4418_v51  ;;  %v1610_v53 = vcombine.high %v4434_v16, %v4437_v17 }
 0x22b   : > { %v1142_v47 = vrot.slane %v1135_v40, %v4416_v44  ;;  %v1150_v48 = vrot.slane %v3261_v41, %v4416_v44  ;;  %v1158_v49 = vrot.slane %v1151_v42, %v4416_v44  ;;  %v1166_v50 = vrot.slane %v3262_v43, %v4416_v44  ;;  %3392 = vmatprep.subr.bf16.mxu0 %v3986_v0  ;;  %v3380_v40 = vpop.f32.mrf.mxu0 }
 0x22c   : > { %v1626_v54 = vcombine.high %v4440_v18, %v4443_v19  ;;  %v1505_v57 = vcombine.low %v1481_v30, %v1497_v38  ;;  %v1506_v58 = vcombine.high %v1481_v30, %v1497_v38  ;;  %v1573_v62 = vcombine.low %v1549_v45, %v1565_v52 }
 0x22d   : > { %v1167_v55 = vcombine.low %v1142_v47, %v1150_v48  ;;  %v1183_v56 = vcombine.low %v1158_v49, %v1166_v50  ;;  %v1574_v1 = vcombine.high %v1549_v45, %v1565_v52  ;;  %v1624_v2 = vrot.slane %v1610_v53, %v4418_v51  ;;  %v1043_v41 = vpop.f32.mrf.mxu0 }
 0x22e   : > { %v1640_v3 = vrot.slane %v1626_v54, %v4418_v51  ;;  %v1645_v4 = vpack.c.bf16 %v1573_v62, %v1505_v57  ;;  %v1542_v11 = vcombine.high %v4481_v8, %v4484_v9  ;;  %v1474_v12 = vcombine.high %v4466_v59, %v4469_v60 }
 0x22f   : > { %v1647_v5 = vpack.c.bf16 %v1574_v1, %v1506_v58  ;;  %v1175_v6 = vrot.slane %v1167_v55, %v4418_v51  ;;  %v1191_v7 = vrot.slane %v1183_v56, %v4418_v51  ;;  %v1490_v13 = vcombine.high %v4472_v61, %v4476_v63  ;;  %v3381_v42 = vpop.f32.mrf.mxu0 }
 0x230   : > { %v1643_v16 = vcombine.low %v1624_v2, %v1640_v3  ;;  %v2104_v17 = vsel %vm2099_vm2, %v1645_v4, 0  ;;  %v1644_v19 = vcombine.high %v1624_v2, %v1640_v3  ;;  %v1558_v15 = vcombine.high %v4487_v10, %v1540_v27 }
 0x231   : > { %v2153_v18 = vsel %vm2099_vm2, %v1647_v5, 0  ;;  %3385 = vmatpush3.bf16.xpose.msra.mxu1 %v2104_v17  ;;  %v1199_v14 = vcombine.low %v1175_v6, %v1191_v7  ;;  %v1200_v33 = vcombine.high %v1175_v6, %v1191_v7  ;;  %v1556_v8 = vrot.slane %v1542_v11, %v4418_v51  ;;  %v1046_v43 = vpop.f32.mrf.mxu0  ;;  %v3256_v6 = vld [vmem:[%s4856_s9] ss:$0 sm:$0xff] }
 0x232   : > { %3393 = vmatpush3.bf16.xpose.msra.mxu0 %v2153_v18  ;;  %3398 = vmatprep.subr.bf16.mxu1 %v3986_v0  ;;  %v1650_v20 = vpack.c.bf16 %v1643_v16, %v1643_v16  ;;  %v1652_v21 = vpack.c.bf16 %v1644_v19, %v1644_v19  ;;  %v1572_v9 = vrot.slane %v1558_v15, %v4418_v51 }
 0x233   : > { %3406 = vmatprep.subr.bf16.mxu0 %v3986_v0  ;;  %v1203_v22 = vpack.c.bf16 %v1199_v14, %v1199_v14  ;;  %v1204_v23 = vpack.c.bf16 %v1200_v33, %v1200_v33  ;;  %v1488_v59 = vrot.slane %v1474_v12, %v4418_v51  ;;  %v1504_v60 = vrot.slane %v1490_v13, %v4418_v51 }
 0x234   : > { %v2205_v61 = vsel %vm2099_vm2, %v1650_v20, 0  ;;  %v2254_v63 = vsel %vm2099_vm2, %v1652_v21, 0  ;;  %v1575_v10 = vcombine.low %v1556_v8, %v1572_v9  ;;  %v1576_v24 = vcombine.high %v1556_v8, %v1572_v9 }
 0x235   : > { %v1168_v25 = vcombine.high %v1142_v47, %v1150_v48  ;;  %v1184_v26 = vcombine.high %v1158_v49, %v1166_v50  ;;  %v1507_v27 = vcombine.low %v1488_v59, %v1504_v60  ;;  %v1508_v28 = vcombine.high %v1488_v59, %v1504_v60  ;;  %v832_v47 = vld [vmem:[%s724_s20] sm:$0xff]  ;;  %s2999_s20 = scalar_lea.sflag [#allocation18], %s4328_s3 }
 0x236   : > { %v1052_v11 = vadd.f32 %v3380_v40, %v3256_v6  ;;  %v4573_v20 = vadd.f32 %v3256_v6, %v1046_v43  ;;  %v4577_v21 = vadd.f32 %v3256_v6, %v1043_v41 }
 0x237   : > { %v1649_v29 = vpack.c.bf16 %v1575_v10, %v1507_v27  ;;  %v1651_v30 = vpack.c.bf16 %v1576_v24, %v1508_v28  ;;  %v1182_v31 = vrot.slane %v1168_v25, %v4418_v51  ;;  %v1198_v32 = vrot.slane %v1184_v26, %v4418_v51 }
 0x238   : > { %3387 = vmatmul.mubr.msk.bf16.vlgmr.msra.gmra.mxu1 %vm2099_vm2, %v1203_v22 }
 0x239   : > { %3395 = vmatmul.mubr.msk.bf16.vlgmr.msra.gmra.mxu0 %vm2099_vm2, %v1204_v23  ;;  %3399 = vmatpush3.bf16.xpose.msra.mxu1 %v2205_v61  ;;  %v2202_v34 = vsel %vm2099_vm2, %v1649_v29, 0  ;;  %v2251_v35 = vsel %vm2099_vm2, %v1651_v30, 0  ;;  %v1201_v36 = vcombine.low %v1182_v31, %v1198_v32  ;;  %v1202_v37 = vcombine.high %v1182_v31, %v1198_v32 }
 0x23a   : > { %3407 = vmatpush3.bf16.xpose.msra.mxu0 %v2254_v63  ;;  %3400 = vmatprep.subr.bf16.mxu1 %v3986_v0 }
 0x23b   : > { %3408 = vmatprep.subr.bf16.mxu0 %v3986_v0  ;;  %3402 = vmatprep.mubr.msk.bf16.mxu1 %vm3987_vm0, %v3986_v0  ;;  %v1205_v38 = vpack.c.bf16 %v1201_v36, %v1201_v36  ;;  %v1206_v39 = vpack.c.bf16 %v1202_v37, %v1202_v37 }
 0x23c   : > { %3410 = vmatprep.mubr.msk.bf16.mxu0 %vm3987_vm0, %v3986_v0 }
 0x241   : > { %3401 = vmatpush3.bf16.xpose.msra.mxu1 %v2202_v34 }
 0x242   : > { %3409 = vmatpush3.bf16.xpose.msra.mxu0 %v2251_v35  ;;  %3414 = vmatprep.subr.bf16.mxu1 %v3986_v0 }
 0x243   : > { %3422 = vmatprep.subr.bf16.mxu0 %v3986_v0 }
 0x248   : > { %3403 = vmatmul.mubr.msk.bf16.vlgmr.msra.gmra.mxu1 %vm2099_vm2, %v1205_v38 }
 0x249   : > { %3411 = vmatmul.mubr.msk.bf16.vlgmr.msra.gmra.mxu0 %vm2099_vm2, %v1206_v39  ;;  %3418 = vmatprep.mubr.msk.bf16.mxu1 %vm3987_vm0, %v3986_v0 }
 0x24a   : > { %3426 = vmatprep.mubr.msk.bf16.mxu0 %vm3987_vm0, %v3986_v0 }
 0x2f8   : > { %v2143_v45 = vpop.f32.mrf.mxu1 }
 0x2f9   : > { %v2192_v46 = vpop.f32.mrf.mxu0  ;;  %v2296_v48 = vmul.f32 0.35355338, %v2143_v45 }
 0x2fa   : > { %v2297_v49 = vmul.f32 0.35355338, %v2192_v46  ;;  %v3388_v50 = vpop.f32.mrf.mxu1 }
 0x2fb   : > { %v3396_v52 = vpop.f32.mrf.mxu0  ;;  %v2300_v53 = vadd.f32 %v2296_v48, %v832_v47 }
 0x2fc   : > { %v2301_v54 = vadd.f32 %v2297_v49, %v832_v47  ;;  %v2146_v55 = vpop.f32.mrf.mxu1 }
 0x2fd   : > { %v2195_v56 = vpop.f32.mrf.mxu0  ;;  %v2305_v57 = vsel %vm2304_vm3, %v2300_v53, -inf }
 0x2fe   : > { %v2308_v58 = vsel %vm2304_vm3, %v2301_v54, -inf  ;;  %2306 = vmax.xlane.f32.xlu0 %v2305_v57  ;;  %v3389_v62 = vpop.f32.mrf.mxu1 }
 0x2ff   : > { %2309 = vmax.xlane.f32.xlu1 %v2308_v58  ;;  %v3397_v1 = vpop.f32.mrf.mxu0 }
 0x308   : > { %v2241_v2 = vpop.f32.mrf.mxu1 }
 0x309   : > { %v2290_v3 = vpop.f32.mrf.mxu0  ;;  %v2298_v4 = vmul.f32 0.35355338, %v2241_v2 }
 0x30a   : > { %v2299_v5 = vmul.f32 0.35355338, %v2290_v3  ;;  %v3404_v7 = vpop.f32.mrf.mxu1 }
 0x30b   : > { %v3412_v16 = vpop.f32.mrf.mxu0  ;;  %v2302_v17 = vadd.f32 %v2298_v4, %v832_v47 }
 0x30c   : > { %v2244_v18 = vpop.f32.mrf.mxu1  ;;  %v2303_v13 = vadd.f32 %v2299_v5, %v832_v47 }
 0x30d   : > { %v2293_v19 = vpop.f32.mrf.mxu0  ;;  %v2311_v12 = vsel %vm2304_vm3, %v2302_v17, -inf }
 0x30e   : > { %2312 = vmax.xlane.f32.xlu0 %v2311_v12  ;;  %v3405_v14 = vpop.f32.mrf.mxu1  ;;  %v2314_v15 = vsel %vm2304_vm3, %v2303_v13, -inf }
 0x30f   : > { %v3413_v33 = vpop.f32.mrf.mxu0 }
 0x310   : > { %1660 = vrot.lane.b32.xlu1 %v1052_v11, %s3989_s8 }
 0x312   : > { %2315 = vmax.xlane.f32.xlu0 %v2314_v15 }
 0x314   : > { %1678 = vrot.lane.b32.xlu1 %v1052_v11, %s3988_s6 }
 0x318   : > { %1658 = vrot.lane.b32.xlu1 %v4573_v20, %s3989_s8 }
 0x31c   : > { %1665 = vrot.lane.b32.xlu1 %v4577_v21, %s3990_s19 }
 0x328   : > { %1669 = vrot.lane.b32.xlu0 %v1052_v11, %s3990_s19 }
 0x32c   : > { %1656 = vrot.lane.b32.xlu0 %v4577_v21, %s3989_s8  ;;  %s3311_s8 = sshll.u32 %s4130_s29, 9 }
 0x32d   : > { %s4776_s0 = scalar_lea.hbm %s4936_s10, %s3311_s8 }
 0x330   : > { %1667 = vrot.lane.b32.xlu0 %v4573_v20, %s3990_s19  ;;  %s3025_s19 = sshll.u32 %s4639_s2, 4  ;;  %s4778_s19 = int_to_ptr.vmem [resolvable:$true] %s3025_s19 }
 0x331   : > { %s3858_s21 = scalar_lea.vmem %s4778_s19, 512 }
 0x332   : > { %p3859_p9 = scmp.ne.s32.totalorder %s4778_s19, %s3858_s21 }
 0x387   : > { %v2307_v8 = vpop.xlane.xlu0 %2306 }
 0x388   : > { %v2310_v9 = vpop.xlane.xlu1 %2309  ;;  %v2317_v22 = vsub.f32 %v2300_v53, %v2307_v8 }
 0x389   : > { %v2318_v23 = vsub.f32 %v2301_v54, %v2310_v9 }
 0x38a   : > { %v2321_v59 = vmul.f32 1.442695, %v2317_v22 }
 0x38b   : > { %v2323_v60 = vmul.f32 1.442695, %v2318_v23 }
 0x38c   : > { %3621 = vpow2.f32 %v2321_v59  ;;  %v1661_v61 = vpop.permute.xlu1 %1660 }
 0x38d   : > { %3623 = vpow2.f32 %v2323_v60 }
 0x390   : > { %v1679_v28 = vpop.permute.xlu1 %1678 }
 0x391   : > { %v1835_v32 = vcombine.low %v1661_v61, %v1679_v28  ;;  %v1836_v34 = vcombine.high %v1661_v61, %v1679_v28 }
 0x393   : > { %v1843_v39 = vrot.slane %v1835_v32, %v4416_v44  ;;  %v1850_v40 = vrot.slane %v1836_v34, %v4416_v44 }
 0x397   : > { %v2313_v63 = vpop.xlane.xlu0 %2312 }
 0x398   : > { %v2319_v10 = vsub.f32 %v2302_v17, %v2313_v63 }
 0x399   : > { %v4586_v24 = vpop.eup %3621 }
 0x39a   : > { %v4588_v25 = vpop.eup %3623  ;;  %v2325_v26 = vmul.f32 1.442695, %v2319_v10  ;;  %v2329_v27 = vsel %vm2304_vm3, %v4586_v24, 0.0  ;;  %v1659_v10 = vpop.permute.xlu1 %1658 }
 0x39b   : > { %v2316_v29 = vpop.xlane.xlu0 %2315  ;;  %2330 = vadd.xlane.f32.xlu1 %v2329_v27  ;;  %v2332_v30 = vsel %vm2304_vm3, %v4588_v25, 0.0 }
 0x39c   : > { %3625 = vpow2.f32 %v2325_v26  ;;  %v2320_v31 = vsub.f32 %v2303_v13, %v2316_v29  ;;  %2333 = vadd.xlane.f32.xlu0 %v2332_v30 }
 0x39e   : > { %v2327_v35 = vmul.f32 1.442695, %v2320_v31  ;;  %v1666_v27 = vpop.permute.xlu1 %1665 }
 0x39f   : > { %v1670_v36 = vpop.permute.xlu0 %1669 }
 0x3a0   : > { %3627 = vpow2.f32 %v2327_v35  ;;  %v1819_v37 = vcombine.low %v1052_v11, %v1670_v36  ;;  %v1820_v38 = vcombine.high %v1052_v11, %v1670_v36 }
 0x3a2   : > { %v1827_v41 = vrot.slane %v1819_v37, %v4416_v44  ;;  %v1834_v42 = vrot.slane %v1820_v38, %v4416_v44 }
 0x3a3   : > { %v1657_v26 = vpop.permute.xlu0 %1656 }
 0x3a4   : > { %v1851_v43 = vcombine.low %v1827_v41, %v1843_v39  ;;  %v1852_v45 = vcombine.high %v1827_v41, %v1843_v39  ;;  %v1867_v46 = vcombine.low %v1834_v42, %v1850_v40  ;;  %v1868_v47 = vcombine.high %v1834_v42, %v1850_v40 }
 0x3a5   : > { %v1683_v40 = vcombine.low %v4577_v21, %v1666_v27  ;;  %v1684_v41 = vcombine.high %v4577_v21, %v1666_v27 }
 0x3a6   : > { %v1859_v48 = vrot.slane %v1851_v43, %v4418_v51  ;;  %v1866_v49 = vrot.slane %v1852_v45, %v4418_v51  ;;  %v1875_v50 = vrot.slane %v1867_v46, %v4418_v51  ;;  %v1882_v52 = vrot.slane %v1868_v47, %v4418_v51 }
 0x3a7   : > { %v1668_v28 = vpop.permute.xlu0 %1667 }
 0x3a8   : > { %v2023_v53 = vcombine.low %v1859_v48, %v1866_v49  ;;  %v3273_v54 = vcombine.high %v1859_v48, %v1866_v49  ;;  %v2039_v55 = vcombine.low %v1875_v50, %v1882_v52  ;;  %v3274_v56 = vcombine.high %v1875_v50, %v1882_v52 }
 0x3a9   : > { %v4602_v57 = vpop.eup %3625  ;;  %v1751_v50 = vcombine.low %v4573_v20, %v1668_v28  ;;  %v1752_v52 = vcombine.high %v4573_v20, %v1668_v28 }
 0x3aa   : > { %v2030_v58 = vrot.slane %v2023_v53, %v4416_v44  ;;  %v2038_v62 = vrot.slane %v3273_v54, %v4416_v44  ;;  %v2046_v1 = vrot.slane %v2039_v55, %v4416_v44  ;;  %v2054_v2 = vrot.slane %v3274_v56, %v4416_v44 }
 0x3ab   : > { %v2335_v3 = vsel %vm2304_vm3, %v4602_v57, 0.0 }
 0x3ac   : > { %2336 = vadd.xlane.f32.xlu1 %v2335_v3  ;;  %v2055_v4 = vcombine.low %v2030_v58, %v2038_v62  ;;  %v2071_v5 = vcombine.low %v2046_v1, %v2054_v2  ;;  %v2056_v6 = vcombine.high %v2030_v58, %v2038_v62  ;;  %v2072_v7 = vcombine.high %v2046_v1, %v2054_v2 }
 0x3ad   : > { %v4610_v16 = vpop.eup %3627  ;;  %v1759_v2 = vrot.slane %v1751_v50, %v4416_v44  ;;  %v1766_v3 = vrot.slane %v1752_v52, %v4416_v44 }
 0x3ae   : > { %v2338_v17 = vsel %vm2304_vm3, %v4610_v16, 0.0  ;;  %v2063_v18 = vrot.slane %v2055_v4, %v4418_v51  ;;  %v2079_v19 = vrot.slane %v2071_v5, %v4418_v51  ;;  %v2070_v11 = vrot.slane %v2056_v6, %v4418_v51 }
 0x3af   : > { %2339 = vadd.xlane.f32.xlu0 %v2338_v17  ;;  %v2086_v12 = vrot.slane %v2072_v7, %v4418_v51 }
 0x3b0   : > { %v2087_v13 = vcombine.low %v2063_v18, %v2079_v19  ;;  %v2088_v14 = vcombine.high %v2063_v18, %v2079_v19 }
 0x3b1   : > { %v2089_v33 = vcombine.low %v2070_v11, %v2086_v12  ;;  %v2090_v15 = vcombine.high %v2070_v11, %v2086_v12 }
 0x3b2   : > { %v2092_v8 = vpack.c.bf16 %v2087_v13, %v2087_v13  ;;  %v2094_v9 = vpack.c.bf16 %v2088_v14, %v2088_v14 }
 0x3b3   : > { %v2096_v22 = vpack.c.bf16 %v2089_v33, %v2089_v33  ;;  %v2098_v23 = vpack.c.bf16 %v2090_v15, %v2090_v15 }
 0x3b4   : > { %v2374_v59 = vsel %vm2372_vm4, %v2092_v8, 0  ;;  %v2420_v60 = vsel %vm2372_vm4, %v2094_v9, 0 }
 0x3b5   : > { %3415 = vmatpush3.bf16.msra.mxu1 %v2374_v59  ;;  %3423 = vmatpush3.bf16.msra.mxu0 %v2420_v60  ;;  %v4618_v61 = vsel %vm2372_vm4, %v2096_v22, 0  ;;  %v4620_v63 = vsel %vm2372_vm4, %v2098_v23, 0 }
 0x3b6   : > { %3416 = vmatprep.subr.bf16.mxu1 %v3986_v0  ;;  %3424 = vmatprep.subr.bf16.mxu0 %v3986_v0 }
 0x3bd   : > { %1674 = vrot.lane.b32.xlu1 %v4577_v21, %s3988_s6  ;;  %v1691_v21 = vrot.slane %v1683_v40, %v4416_v44 }
 0x3c5   : > { %1676 = vrot.lane.b32.xlu0 %v4573_v20, %s3988_s6  ;;  %s4935_s6 = sld [smem:[#allocation31_spill]] }
 0x3cb   : > { %p4937_p1 = scmp.ne.s32.totalorder %s4935_s6, 0 }
 0x3cd   : > { %p3860_p4 = pnand %p3859_p9, %p4937_p1 }
 0x3cf   : > { %p3861_p6 = pneg %p3860_p4 }
 0x424   : > { %v2331_v29 = vpop.xlane.xlu1 %2330 }
 0x425   : > { %3629 = vrcp.f32 %v2331_v29  ;;  %v2334_v30 = vpop.xlane.xlu0 %2333 }
 0x426   : > { %3631 = vrcp.f32 %v2334_v30 }
 0x432   : > { %v3630_v31 = vpop.eup %3629 }
 0x433   : > { %v3632_v32 = vpop.eup %3631  ;;  %v2345_v34 = vmul.f32 %v3630_v31, %v2331_v29 }
 0x434   : > { %v2346_v35 = vmul.f32 %v3632_v32, %v2334_v30 }
 0x435   : > { %v2349_v36 = vsub.f32 2.0, %v2345_v34  ;;  %v2337_v37 = vpop.xlane.xlu1 %2336 }
 0x436   : > { %v2350_v38 = vsub.f32 2.0, %v2346_v35  ;;  %3633 = vrcp.f32 %v2337_v37 }
 0x437   : > { %v2353_v39 = vmul.f32 %v3630_v31, %v2349_v36 }
 0x438   : > { %v2354_v42 = vmul.f32 %v3632_v32, %v2350_v38  ;;  %v2340_v43 = vpop.xlane.xlu0 %2339 }
 0x439   : > { %v4632_v45 = vmul.f32 %v4586_v24, %v2353_v39  ;;  %v1675_v46 = vpop.permute.xlu1 %1674  ;;  %3635 = vrcp.f32 %v2340_v43  ;;  %v1698_v24 = vrot.slane %v1684_v41, %v4416_v44 }
 0x43a   : > { %v4635_v47 = vmul.f32 %v4588_v25, %v2354_v42  ;;  %v1699_v48 = vcombine.low %v1657_v26, %v1675_v46  ;;  %v1700_v49 = vcombine.high %v1657_v26, %v1675_v46 }
 0x43b   : > { %2361 = vst.msk [vmem:[%s4639_s2] sm:$0xff] %vm2304_vm3, %v4632_v45 }
 0x43c   : > { %2362 = vst.msk [vmem:[%s4639_s2 + $0x8] sm:$0xff] %vm2304_vm3, %v4635_v47  ;;  %v1707_v25 = vrot.slane %v1699_v48, %v4416_v44  ;;  %v1714_v53 = vrot.slane %v1700_v49, %v4416_v44  ;;  %v1677_v54 = vpop.permute.xlu0 %1676 }
 0x43d   : > { %v1767_v20 = vcombine.low %v1659_v10, %v1677_v54  ;;  %v1768_v55 = vcombine.high %v1659_v10, %v1677_v54 }
 0x43e   : > { %v1715_v56 = vcombine.low %v1691_v21, %v1707_v25  ;;  %v1716_v58 = vcombine.high %v1691_v21, %v1707_v25  ;;  %v1731_v62 = vcombine.low %v1698_v24, %v1714_v53  ;;  %v1732_v1 = vcombine.high %v1698_v24, %v1714_v53 }
 0x43f   : > { %v1775_v4 = vrot.slane %v1767_v20, %v4416_v44  ;;  %v1782_v5 = vrot.slane %v1768_v55, %v4416_v44 }
 0x440   : > { %v1723_v6 = vrot.slane %v1715_v56, %v4418_v51  ;;  %v1730_v7 = vrot.slane %v1716_v58, %v4418_v51  ;;  %v1739_v17 = vrot.slane %v1731_v62, %v4418_v51  ;;  %v1746_v18 = vrot.slane %v1732_v1, %v4418_v51 }
 0x441   : > { %v1783_v19 = vcombine.low %v1759_v2, %v1775_v4  ;;  %v1784_v11 = vcombine.high %v1759_v2, %v1775_v4  ;;  %v1799_v12 = vcombine.low %v1766_v3, %v1782_v5  ;;  %v1800_v13 = vcombine.high %v1766_v3, %v1782_v5 }
 0x442   : > { %v1887_v14 = vcombine.low %v1723_v6, %v1730_v7  ;;  %v3269_v33 = vcombine.high %v1723_v6, %v1730_v7  ;;  %v1903_v15 = vcombine.low %v1739_v17, %v1746_v18  ;;  %v3270_v8 = vcombine.high %v1739_v17, %v1746_v18 }
 0x443   : > { %v3634_v9 = vpop.eup %3633  ;;  %v1791_v22 = vrot.slane %v1783_v19, %v4418_v51  ;;  %v1798_v23 = vrot.slane %v1784_v11, %v4418_v51  ;;  %v1807_v59 = vrot.slane %v1799_v12, %v4418_v51  ;;  %v1814_v60 = vrot.slane %v1800_v13, %v4418_v51 }
 0x444   : > { %v2347_v10 = vmul.f32 %v3634_v9, %v2337_v37  ;;  %v1894_v26 = vrot.slane %v1887_v14, %v4416_v44  ;;  %v1902_v27 = vrot.slane %v3269_v33, %v4416_v44  ;;  %v1910_v28 = vrot.slane %v1903_v15, %v4416_v44 }
 0x445   : > { %v1918_v29 = vrot.slane %v3270_v8, %v4416_v44  ;;  %v1955_v30 = vcombine.low %v1791_v22, %v1798_v23  ;;  %v3271_v31 = vcombine.high %v1791_v22, %v1798_v23  ;;  %v1971_v32 = vcombine.low %v1807_v59, %v1814_v60 }
 0x446   : > { %v3636_v34 = vpop.eup %3635  ;;  %v2351_v35 = vsub.f32 2.0, %v2347_v10  ;;  %v3272_v36 = vcombine.high %v1807_v59, %v1814_v60  ;;  %v1919_v38 = vcombine.low %v1894_v26, %v1902_v27  ;;  %v1920_v58 = vcombine.high %v1894_v26, %v1902_v27 }
 0x447   : > { %v2348_v39 = vmul.f32 %v3636_v34, %v2340_v43  ;;  %v1962_v40 = vrot.slane %v1955_v30, %v4416_v44  ;;  %v1970_v37 = vrot.slane %v3271_v31, %v4416_v44  ;;  %v1978_v41 = vrot.slane %v1971_v32, %v4416_v44 }
 0x448   : > { %v2355_v42 = vmul.f32 %v3634_v9, %v2351_v35  ;;  %v1986_v46 = vrot.slane %v3272_v36, %v4416_v44  ;;  %v1935_v48 = vcombine.low %v1910_v28, %v1918_v29  ;;  %v1927_v21 = vrot.slane %v1919_v38, %v4418_v51 }
 0x449   : > { %v2352_v49 = vsub.f32 2.0, %v2348_v39  ;;  %v1987_v50 = vcombine.low %v1962_v40, %v1970_v37  ;;  %v1988_v20 = vcombine.high %v1962_v40, %v1970_v37  ;;  %v1936_v62 = vcombine.high %v1910_v28, %v1918_v29 }
 0x44a   : > { %v2359_v52 = vmul.f32 %v4602_v57, %v2355_v42  ;;  %v1943_v24 = vrot.slane %v1935_v48, %v4418_v51  ;;  %v2003_v43 = vcombine.low %v1978_v41, %v1986_v46  ;;  %v2004_v55 = vcombine.high %v1978_v41, %v1986_v46 }
 0x44b   : > { %v2356_v25 = vmul.f32 %v3636_v34, %v2352_v49  ;;  %v1995_v53 = vrot.slane %v1987_v50, %v4418_v51  ;;  %v2002_v6 = vrot.slane %v1988_v20, %v4418_v51  ;;  %v1934_v17 = vrot.slane %v1920_v58, %v4418_v51  ;;  %v3613_v50 = vld [vmem:[#allocation13 + $0x8] sm:$0xff]  }
 0x44c   : > { %2363 = vst.msk [vmem:[%s4639_s2 + $0x10] sm:$0xff] %vm2304_vm3, %v2359_v52  ;;  %v2011_v54 = vrot.slane %v2003_v43, %v4418_v51  ;;  %v1951_v57 = vcombine.low %v1927_v21, %v1943_v24  ;;  %v1952_v2 = vcombine.high %v1927_v21, %v1943_v24  ;;  %v2018_v7 = vrot.slane %v2004_v55, %v4418_v51 }
 0x44d   : > { %v2360_v56 = vmul.f32 %v4610_v16, %v2356_v25  ;;  %v1950_v16 = vrot.slane %v1936_v62, %v4418_v51  ;;  %v2365_v18 = vpack.c.bf16 %v4632_v45, %v4632_v45  ;;  %v2366_v19 = vpack.c.bf16 %v4635_v47, %v4635_v47 }
 0x44e   : > { %v2019_v1 = vcombine.low %v1995_v53, %v2011_v54  ;;  %v2020_v3 = vcombine.high %v1995_v53, %v2011_v54  ;;  %v2021_v11 = vcombine.low %v2002_v6, %v2018_v7  ;;  %v2022_v12 = vcombine.high %v2002_v6, %v2018_v7 }
 0x44f   : > { %2364 = vst.msk [vmem:[%s4639_s2 + $0x18] sm:$0xff] %vm2304_vm3, %v2360_v56  ;;  %v1953_v13 = vcombine.low %v1934_v17, %v1950_v16  ;;  %v1954_v14 = vcombine.high %v1934_v17, %v1950_v16  ;;  %v2367_v33 = vpack.c.bf16 %v2359_v52, %v2359_v52 }
 0x450   : > { %v2091_v4 = vpack.c.bf16 %v2019_v1, %v1951_v57  ;;  %v2093_v5 = vpack.c.bf16 %v2020_v3, %v1952_v2  ;;  %v3614_v57 = vld [vmem:[#allocation13] sm:$0xff]  }
 0x451   : > { %v2095_v45 = vpack.c.bf16 %v2021_v11, %v1953_v13  ;;  %v2097_v47 = vpack.c.bf16 %v2022_v12, %v1954_v14 }
 0x452   : > { %3417 = vmatpush3.bf16.msra.mxu1 %v2091_v4  ;;  %3425 = vmatpush3.bf16.msra.mxu0 %v2093_v5 }
 0x453   : > { %3430 = vmatprep.subr.bf16.mxu1 %v3986_v0  ;;  %3438 = vmatprep.subr.bf16.mxu0 %v3986_v0 }
 0x455   : > { %3419 = vmatmul.mubr.msk.bf16.vlgmr.msra.gmra.mxu1 %vm2304_vm3, %v2365_v18  ;;  %3427 = vmatmul.mubr.msk.bf16.vlgmr.msra.gmra.mxu0 %vm2304_vm3, %v2366_v19 }
 0x456   : > { %3431 = vmatpush3.bf16.msra.mxu1 %v4618_v61  ;;  %3439 = vmatpush3.bf16.msra.mxu0 %v4620_v63  ;;  %v2368_v61 = vpack.c.bf16 %v2360_v56, %v2360_v56 }
 0x457   : > { %3432 = vmatprep.subr.bf16.mxu1 %v3986_v0  ;;  %3440 = vmatprep.subr.bf16.mxu0 %v3986_v0 }
 0x458   : > { %3434 = vmatprep.mubr.msk.bf16.mxu1 %vm3987_vm0, %v3986_v0  ;;  %3442 = vmatprep.mubr.msk.bf16.mxu0 %vm3987_vm0, %v3986_v0 }
 0x45a   : > { %3433 = vmatpush3.bf16.msra.mxu1 %v2095_v45  ;;  %3441 = vmatpush3.bf16.msra.mxu0 %v2097_v47 }
 0x45b   : > { %3446 = vmatprep.subr.bf16.mxu1 %v3986_v0  ;;  %3454 = vmatprep.subr.bf16.mxu0 %v3986_v0 }
 0x45d   : > { %3435 = vmatmul.mubr.msk.bf16.vlgmr.msra.gmra.mxu1 %vm2304_vm3, %v2367_v33  ;;  %3443 = vmatmul.mubr.msk.bf16.vlgmr.msra.gmra.mxu0 %vm2304_vm3, %v2368_v61  ;;  %v3285_v33 = vld [vmem:[%s4858_s11] ss:$0 sm:$0xff] }
 0x45e   : > { %3450 = vmatprep.mubr.msk.bf16.mxu1 %vm3987_vm0, %v3986_v0  ;;  %3458 = vmatprep.mubr.msk.bf16.mxu0 %vm3987_vm0, %v3986_v0 }
 0x45f   : > { %3447 = vmatpush3.bf16.msra.mxu1 %v3613_v50  ;;  %v3291_v50 = vld [vmem:[%s4862_s15] ss:$0 sm:$0xff] }
 0x460   : > { %3448 = vmatprep.subr.bf16.mxu1 %v3986_v0 }
 0x463   : > { %3449 = vmatpush3.bf16.msra.mxu1 %v3614_v57 }
 0x464   : > { %3462 = vmatprep.subr.bf16.mxu1 %v3986_v0 }
 0x515   : > { %v2410_v63 = vpop.f32.mrf.mxu1  ;;  %v2456_v15 = vpop.f32.mrf.mxu0 }
 0x517   : > { %v3420_v8 = vpop.f32.mrf.mxu1  ;;  %v3428_v9 = vpop.f32.mrf.mxu0 }
 0x518   : > { %v3645_v8 = vld [vmem:[%s715_s30] sm:$0xff] }
 0x519   : > { %v2413_v22 = vpop.f32.mrf.mxu1  ;;  %v2459_v23 = vpop.f32.mrf.mxu0 }
 0x51b   : > { %v3421_v59 = vpop.f32.mrf.mxu1  ;;  %v3429_v60 = vpop.f32.mrf.mxu0 }
 0x51d   : > { %v2502_v10 = vpop.f32.mrf.mxu1  ;;  %v2548_v26 = vpop.f32.mrf.mxu0 }
 0x51e   : > { %v2554_v27 = vcombine.low %v2410_v63, %v2502_v10  ;;  %v2555_v28 = vcombine.high %v2410_v63, %v2502_v10  ;;  %v2570_v29 = vcombine.low %v2456_v15, %v2548_v26  ;;  %v2571_v30 = vcombine.high %v2456_v15, %v2548_v26 }
 0x51f   : > { %v3436_v31 = vpop.f32.mrf.mxu1  ;;  %v3444_v32 = vpop.f32.mrf.mxu0 }
 0x520   : > { %v2562_v34 = vrot.slane %v2554_v27, %v4416_v44  ;;  %v2569_v35 = vrot.slane %v2555_v28, %v4416_v44  ;;  %v2578_v36 = vrot.slane %v2570_v29, %v4416_v44  ;;  %v2585_v38 = vrot.slane %v2571_v30, %v4416_v44  ;;  %v3615_v29 = vld [vmem:[#allocation14 + $0x8] sm:$0xff]   ;;  %v3616_v30 = vld [vmem:[#allocation14] sm:$0xff]  }
 0x521   : > { %v2505_v39 = vpop.f32.mrf.mxu1  ;;  %v2551_v40 = vpop.f32.mrf.mxu0  ;;  %3455 = vmatpush3.bf16.msra.mxu0 %v3615_v29 }
 0x522   : > { %v2586_v37 = vcombine.low %v2562_v34, %v2578_v36  ;;  %v2587_v41 = vcombine.high %v2562_v34, %v2578_v36  ;;  %v2602_v42 = vcombine.low %v2569_v35, %v2585_v38  ;;  %v2603_v46 = vcombine.high %v2569_v35, %v2585_v38  ;;  %3456 = vmatprep.subr.bf16.mxu0 %v3986_v0  ;;  %v3289_v36 = vld [vmem:[%s4859_s12] ss:$0 sm:$0xff] }
 0x523   : > { %v3437_v48 = vpop.f32.mrf.mxu1  ;;  %v3445_v49 = vpop.f32.mrf.mxu0  ;;  %v3290_v39 = vld [vmem:[%s4860_s13] ss:$0 sm:$0xff] }
 0x524   : > { %v2594_v52 = vrot.slane %v2586_v37, %v4418_v51  ;;  %v2601_v21 = vrot.slane %v2587_v41, %v4418_v51  ;;  %v2610_v24 = vrot.slane %v2602_v42, %v4418_v51  ;;  %v2617_v43 = vrot.slane %v2603_v46, %v4418_v51  ;;  %v3617_v42 = vld [vmem:[%s4863_s16 + $0x18] sm:$0xff]   ;;  %v3618_v46 = vld [vmem:[%s4863_s16 + $0x10] sm:$0xff]   ;;  %v3619_v48 = vld [vmem:[%s4863_s16 + $0x8] sm:$0xff]  }
 0x525   : > { %3457 = vmatpush3.bf16.msra.mxu0 %v3616_v30  ;;  %v3620_v49 = vld [vmem:[%s4863_s16] sm:$0xff]  }
 0x526   : > { %v2622_v25 = vcombine.low %v2594_v52, %v2601_v21  ;;  %v3283_v53 = vcombine.high %v2594_v52, %v2601_v21  ;;  %v2638_v54 = vcombine.low %v2610_v24, %v2617_v43  ;;  %v3284_v20 = vcombine.high %v2610_v24, %v2617_v43 }
 0x528   : > { %v2629_v55 = vrot.slane %v2622_v25, %v4416_v44  ;;  %v2637_v56 = vrot.slane %v3283_v53, %v4416_v44  ;;  %v2645_v58 = vrot.slane %v2638_v54, %v4416_v44  ;;  %v2653_v62 = vrot.slane %v3284_v20, %v4416_v44 }
 0x52a   : > { %v2655_v1 = vcombine.high %v2629_v55, %v2637_v56  ;;  %v2671_v2 = vcombine.high %v2645_v58, %v2653_v62  ;;  %v2654_v3 = vcombine.low %v2629_v55, %v2637_v56  ;;  %v2670_v4 = vcombine.low %v2645_v58, %v2653_v62 }
 0x52c   : > { %v2669_v5 = vrot.slane %v2655_v1, %v4418_v51  ;;  %v2685_v6 = vrot.slane %v2671_v2, %v4418_v51  ;;  %v2662_v7 = vrot.slane %v2654_v3, %v4418_v51  ;;  %v2678_v17 = vrot.slane %v2670_v4, %v4418_v51 }
 0x52e   : > { %v2688_v16 = vcombine.low %v2669_v5, %v2685_v6  ;;  %v2687_v18 = vcombine.high %v2662_v7, %v2678_v17  ;;  %v2686_v19 = vcombine.low %v2662_v7, %v2678_v17  ;;  %v2689_v44 = vcombine.high %v2669_v5, %v2685_v6 }
 0x530   : > { %2695 = vrot.lane.b32.xlu0 %v2688_v16, %s3993_s22  ;;  %2691 = vrot.lane.b32.xlu1 %v2687_v18, %s3994_s5  ;;  %s3996_s22 = smov [#allocation17]  }
 0x534   : > { %2699 = vrot.lane.b32.xlu1 %v2689_v44, %s3995_s14  ;;  %s3862_s14 = sshll.u32 %s3996_s22, 4  ;;  %s3863_s14 = int_to_ptr.vmem [resolvable:$false] %s3862_s14 }
 0x535   : > { %s3864_s2 = scalar_lea.vmem %s3863_s14, 1024  ;;  %p3865_p2 = scmp.lt.s32.totalorder %s4778_s19, %s3863_s14 }
 0x536   : > { %p3866_p3 = scmp.lt.s32.totalorder %s3864_s2, %s3858_s21 }
 0x538   : > { %p3867_p7 = por %p3866_p3, %p3865_p2 }
 0x53a   : > { %p3868_p12 = pnand %p3867_p7, %p3861_p6 }
 0x5a2   : > { %v2692_v11 = vpop.permute.xlu1 %2691  ;;  %v2696_v12 = vpop.permute.xlu0 %2695 }
 0x5a3   : > { %v2702_v13 = vsel %vm2099_vm2, %v2686_v19, %v2692_v11 }
 0x5a4   : > { %v2704_v45 = vsel %vm2703_vm5, %v2702_v13, %v2696_v12 }
 0x5a6   : > { %v2700_v14 = vpop.permute.xlu1 %2699 }
 0x5a7   : > { %v2705_v51 = vsel %vm2304_vm3, %v2704_v45, %v2700_v14 }
 0x5a8   : > { %v2706_v47 = vpack.c.bf16 %v2705_v51, %v2705_v51 }
 0x5aa   : > { %3451 = vmatmul.mubr.msk.bf16.vlgmr.msra.gmra.mxu1 %vm859_vm1, %v2706_v47 }
 0x5ab   : > { %3470 = vmatprep.mubr.msk.bf16.mxu1 %vm3987_vm0, %v3986_v0  ;;  %3463 = vmatpush3.bf16.msra.mxu1 %v3617_v42 }
 0x5ac   : > { %3464 = vmatprep.subr.bf16.mxu1 %v3986_v0 }
 0x5af   : > { %3465 = vmatpush3.bf16.msra.mxu1 %v3618_v46 }
 0x5b0   : > { %3466 = vmatprep.subr.bf16.mxu1 %v3986_v0 }
 0x5b3   : > { %3467 = vmatpush3.bf16.msra.mxu1 %v3619_v48 }
 0x5b4   : > { %3468 = vmatprep.subr.bf16.mxu1 %v3986_v0  ;;  %v3296_v0 = vld [vmem:[%s4934_s24] ss:$0 sm:$0xff] }
 0x5b7   : > { %3469 = vmatpush3.bf16.msra.mxu1 %v3620_v49 }
 0x66a   : > { %v2767_v61 = vpop.f32.mrf.mxu1 }
 0x66b   : > { %v2768_v63 = vadd.f32 %v3285_v33, %v2767_v61 }
 0x66c   : > { %v3452_v15 = vpop.f32.mrf.mxu1 }
 0x66d   : > { %v2773_v9 = vadd.f32 %v3645_v8, %v2768_v63 }
 0x66e   : > { %v2770_v22 = vpop.f32.mrf.mxu1 }
 0x66f   : > { %v2776_v23 = vsel %vm859_vm1, %v2773_v9, 0.0 }
 0x670   : > { %2777 = vadd.xlane.f32.xlu0 %v2776_v23  ;;  %v3453_v59 = vpop.f32.mrf.mxu1 }
 0x6f9   : > { %v2778_v60 = vpop.xlane.xlu0 %2777 }
 0x6fa   : > { %v2780_v10 = vmul.f32 0.03125, %v2778_v60 }
 0x6fc   : > { %v2781_v26 = vsub.f32 %v2773_v9, %v2780_v10 }
 0x6fe   : > { %v2782_v27 = vmul.f32 %v2781_v26, %v2781_v26 }
 0x700   : > { %v2783_v28 = vsel %vm859_vm1, %v2782_v27, 0.0 }
 0x701   : > { %2784 = vadd.xlane.f32.xlu1 %v2783_v28 }
 0x78a   : > { %v2785_v31 = vpop.xlane.xlu1 %2784 }
 0x78b   : > { %v2786_v32 = vmul.f32 0.03125, %v2785_v31 }
 0x78d   : > { %v2787_v34 = vadd.f32 1e-05, %v2786_v32 }
 0x78f   : > { %3637 = vrsqrt.f32 %v2787_v34 }
 0x79c   : > { %v3638_v35 = vpop.eup %3637 }
 0x79d   : > { %v2789_v38 = vmul.f32 %v3638_v35, %v2781_v26 }
 0x79f   : > { %v2796_v40 = vmul.f32 %v3289_v36, %v2789_v38 }
 0x7a1   : > { %v2803_v37 = vadd.f32 %v3290_v39, %v2796_v40 }
 0x7a3   : > { %v2804_v41 = vpack.c.bf16 %v2803_v37, %v2803_v37 }
 0x7a5   : > { %3459 = vmatmul.mubr.msk.bf16.vlgmr.msra.gmra.mxu0 %vm859_vm1, %v2804_v41 }
 0x865   : > { %v2865_v52 = vpop.f32.mrf.mxu0 }
 0x866   : > { %v2866_v21 = vadd.f32 %v3291_v50, %v2865_v52 }
 0x867   : > { %v3460_v24 = vpop.f32.mrf.mxu0 }
 0x868   : > { %v3295_v43 = vmul.f32 -1.442695, %v2866_v21 }
 0x869   : > { %v2868_v25 = vpop.f32.mrf.mxu0 }
 0x86a   : > { %3639 = vpow2.f32 %v3295_v43 }
 0x86b   : > { %v3461_v53 = vpop.f32.mrf.mxu0 }
 0x877   : > { %v3640_v54 = vpop.eup %3639 }
 0x878   : > { %v2874_v20 = vadd.f32 1.0, %v3640_v54 }
 0x87a   : > { %3641 = vrcp.f32 %v2874_v20 }
 0x887   : > { %v3642_v55 = vpop.eup %3641 }
 0x888   : > { %v2877_v56 = vmul.f32 %v3642_v55, %v2866_v21 }
 0x88a   : > { %v2878_v58 = vpack.c.bf16 %v2877_v56, %v2877_v56 }
 0x88c   : > { %3471 = vmatmul.mubr.msk.bf16.vlgmr.msra.gmra.mxu1 %vm2918_vm6, %v2878_v58 }
 0x94c   : > { %v2956_v62 = vpop.f32.mrf.mxu1 }
 0x94d   : > { %v2957_v57 = vadd.f32 %v3296_v0, %v2956_v62 }
 0x94e   : > { %v3472_v1 = vpop.f32.mrf.mxu1 }
 0x94f   : > { %v2962_v2 = vadd.f32 %v2957_v57, %v2803_v37 }
 0x950   : > { %v2959_v3 = vpop.f32.mrf.mxu1 }
 0x951   : > { %v2965_v4 = vsel %vm859_vm1, %v2962_v2, 0.0 }
 0x952   : > { %2966 = vadd.xlane.f32.xlu0 %v2965_v4  ;;  %v3473_v5 = vpop.f32.mrf.mxu1 }
 0x9db   : > { %v2967_v6 = vpop.xlane.xlu0 %2966 }
 0x9dc   : > { %v2968_v7 = vmul.f32 0.03125, %v2967_v6 }
 0x9de   : > { %v2969_v17 = vsub.f32 %v2962_v2, %v2968_v7 }
 0x9e0   : > { %v2970_v16 = vmul.f32 %v2969_v17, %v2969_v17 }
 0x9e2   : > { %v2971_v18 = vsel %vm859_vm1, %v2970_v16, 0.0 }
 0x9e3   : > { %2972 = vadd.xlane.f32.xlu0 %v2971_v18 }
 0x9e4   : > { %3871 = shalt.err (!%p3868_p12)
}
 0x9e5   : > { %s3872_s26 = scalar_lea.hbm %s4776_s0, 512  ;;  %s3876_s24 = scalar_lea.hbm %s4936_s10, 1024 }
 0x9e6   : > { %p3873_p0 = scmp.ne.s32.totalorder %s4776_s0, %s3872_s26  ;;  %p3877_p11 = scmp.lt.s32.totalorder %s4776_s0, %s4936_s10 }
 0x9e7   : > { %p3878_p13 = scmp.lt.s32.totalorder %s3876_s24, %s3872_s26 }
 0x9e8   : > { %p3874_p8 = pnand %p3873_p0, %p4937_p1 }
 0x9e9   : > { %p3879_p5 = por %p3878_p13, %p3877_p11 }
 0x9ea   : > { %p3875_p10 = pneg %p3874_p8 }
 0x9ec   : > { %p3880_p9 = pnand %p3879_p5, %p3875_p10 }
 0x9ee   : > { %3883 = shalt.err (!%p3880_p9)
}
 0x9ef   : > { %s3997_s17 = smov 128   ;;  %s4938_s14 = sld [smem:[#allocation44_spill]] }
 0x9f0   : > { %3504 = dma.vmem_to_hbm [thread:$0]  (%p4937_p1), %s4778_s19, 512, %s4776_s0, %s2999_s20, %s3997_s17, %s3997_s17, %s3994_s5  }
 0x9f1   : > { %s4939_s4 = sld [smem:[#allocation45_spill]]  ;;  %s3306_s30 = sshll.u32 %s4130_s29, 7 }
 0x9f2   : > { %s814_s24 = scalar_lea.vmem [#allocation16], %s4331_s23  ;;  %s4940_s0 = sld [smem:[#allocation46_spill]] }
 0x9f3   : > { %s3012_s8 = sshll.u32 %s814_s24, 4  ;;  %s2994_s28 = scalar_lea.sflag [#allocation4], %s4328_s3  ;;  %s3013_s8 = int_to_ptr.vmem [resolvable:$true] %s3012_s8 }
 0x9f4   : > { %s3884_s17 = scalar_lea.vmem %s3013_s8, 128  ;;  %s3998_s21 = smov [#allocation16]  }
 0x9f5   : > { %v3302_v13 = vld [vmem:[%s4938_s14] ss:$0 sm:$0xff]  ;;  %p3885_p4 = scmp.ne.s32.totalorder %s3013_s8, %s3884_s17  ;;  %s3888_s22 = sshll.u32 %s3998_s21, 4  ;;  %s3889_s22 = int_to_ptr.vmem [resolvable:$false] %s3888_s22 }
 0x9f6   : > { %s3890_s29 = scalar_lea.vmem %s3889_s22, 256  ;;  %p3891_p3 = scmp.lt.s32.totalorder %s3013_s8, %s3889_s22 }
 0x9f7   : > { %v3303_v45 = vld [vmem:[%s4939_s4] ss:$0 sm:$0xff]  ;;  %p3886_p6 = pnand %p3885_p4, %p4937_p1  ;;  %p3892_p7 = scmp.lt.s32.totalorder %s3890_s29, %s3884_s17 }
 0x9f8   : > { %s3010_s20 = scalar_lea.hbm %s4940_s0, %s3306_s30 }
 0x9f9   : > { %p3887_p2 = pneg %p3886_p6  ;;  %p3893_p12 = por %p3892_p7, %p3891_p3 }
 0x9fb   : > { %p3894_p0 = pnand %p3893_p12, %p3887_p2 }
 0xa6c   : > { %v2973_v19 = vpop.xlane.xlu0 %2972 }
 0xa6d   : > { %v2974_v44 = vmul.f32 0.03125, %v2973_v19 }
 0xa6f   : > { %v2975_v11 = vadd.f32 1e-05, %v2974_v44 }
 0xa71   : > { %3643 = vrsqrt.f32 %v2975_v11 }
 0xa7e   : > { %v3644_v12 = vpop.eup %3643 }
 0xa7f   : > { %v2977_v14 = vmul.f32 %v3644_v12, %v2969_v17 }
 0xa81   : > { %v2984_v51 = vmul.f32 %v3302_v13, %v2977_v14 }
 0xa83   : > { %v2991_v47 = vadd.f32 %v3303_v45, %v2984_v51 }
 0xa85   : > { %2992 = vst.msk [vmem:[%s814_s24] sm:$0xff] %vm859_vm1, %v2991_v47 }
 0xa86   : > { %3897 = shalt.err (!%p3894_p0)
}
 0xa87   : > { %s3898_s23 = scalar_lea.hbm %s3010_s20, 128  ;;  %s3902_s2 = scalar_lea.hbm %s4940_s0, 256 }
 0xa88   : > { %p3899_p8 = scmp.ne.s32.totalorder %s3010_s20, %s3898_s23  ;;  %p3903_p13 = scmp.lt.s32.totalorder %s3010_s20, %s4940_s0 }
 0xa89   : > { %p3904_p5 = scmp.lt.s32.totalorder %s3902_s2, %s3898_s23 }
 0xa8a   : > { %p3900_p10 = pnand %p3899_p8, %p4937_p1 }
 0xa8b   : > { %p3905_p9 = por %p3904_p5, %p3903_p13 }
 0xa8c   : > { %p3901_p11 = pneg %p3900_p10 }
 0xa8e   : > { %p3906_p4 = pnand %p3905_p9, %p3901_p11 }
 0xa90   : > { %3909 = shalt.err (!%p3906_p4)
}
 0xa91   : > { %3503 = dma.vmem_to_hbm [thread:$0]  (%p4937_p1), %s3013_s8, 128, %s3010_s20, %s2994_s28  }
 0xa92 PF: > { %s4941_s30 = sld [smem:[#allocation27_spill]]  ;;  %p4944_p2 = scmp.ge.s32.totalorder %s3972_s27, 2 }
 0xa93   : > { %s4942_s24 = sld [smem:[#allocation32_spill]] }
 0xa98   : > { %s3040_s5 = sand.u32 1, %s4941_s30  }
 0xa99   : > { %p4943_p6 = scmp.ne.s32.totalorder %s4942_s24, 0  ;;  %s3041_s19 = scalar_lea.sflag [#allocation4], %s3040_s5 }
 0xa9b   : > { %p3534_p3 = pnand %p4944_p2, %p4943_p6 }
 0xa9d   : > { %p3535_p7 = pneg %p3534_p3 }
 0xa9f   : > { %3951 = dma.done.wait (%p3535_p7), %s3041_s19, 128  }
 0xaa0   : > { %3953 = vsyncadd (%p3535_p7), %s3041_s19, 4294967168  ;;  %s3050_s17 = scalar_lea.sflag [#allocation18], %s3040_s5 }
 0xaa1   : > { %3955 = dma.done.wait (%p3535_p7), %s3050_s17, 512  }
 0xaa2   : > { %3957 = vsyncadd (%p3535_p7), %s3050_s17, 4294966784  ;;  %s4945_s27 = sld [smem:[#allocation29_spill]]  ;;  %s4948_s2 = smov %s3964_s25 }
 0xaa3   : > { %s4946_s21 = sld [smem:[#allocation28_spill]] }
 0xaa4   : > { %s4947_s26 = sld [smem:[#allocation30_spill]] }
 0xaa8   : > { %p44_p1 = scmp.ge.s32.totalorder %s4945_s27, 4  }
 0xaa9   : > { %s4949_s25 = smov %s4946_s21 }
 0xaaa   :  { %46 = sbr.rel (!%p44_p1) target bundleno = 28 (0x1c), region = 202 }
 0xaaf   :  { %3055 = vsyncpa [#allocation3], 1 }
 0xab0   :  { %3057 = vsyncpa [#allocation3 + $0x1], 1 }
 0xab1   :  { %3058 = vsyncpa [#allocation6], 1 }
 0xab2   :  { %3060 = vsyncpa [#allocation6 + $0x1], 1 }
 0xab3   :  { %3061 = vsyncpa [#allocation9], 1 }
 0xab4   :  { %3062 = vsyncpa [#allocation12], 1 }
 0xab5   :  { %3063 = vsyncpa [#allocation15], 1 }
 0xab6   :  { %3064 = vsyncpa [#allocation4], 1 }
 0xab7   :  { %3066 = vsyncpa [#allocation4 + $0x1], 1 }
 0xab8   :  { %3067 = vsyncpa [#allocation18], 1 }
 0xab9   :  { %3069 = vsyncpa [#allocation18 + $0x1], 1 }

</bundles_post_ra>
